<compile_context>
chip_gen: v7x
topology: tpu7x:2x2x1
jax: 0.10.0
libtpu: 0.0.40
codegen_flags: <defaults>
</compile_context>

<pallas_src>
import functools

import jax
import jax.numpy as jnp
from jax.experimental import pallas as pl
from jax.experimental.pallas import tpu as pltpu


def _round_up(n, m):
    return (n + m - 1) // m * m


# ------------------------------ fused kernel --------------------------------

def _net_kernel(x_ref, w1_ref, b1_ref, w2_ref, b2_ref,
                wf1_ref, bf1_ref, wf2_ref, bf2_ref, wf3_ref, bf3_ref,
                o_ref, h1_ref, h2_ref, *, TB):
    """Full LeNet forward for one batch tile of TB samples.

    x_ref  : (32, TB, 96)    input rows (H-major, batch-minor), lanes = w*3 + c
    w1_ref : (5, 96, 256)    conv1 block-Toeplitz per row-tap; W-pool phases at lanes 0 / 128
    w2_ref : (5, 128, 256)   conv2 block-Toeplitz (K padded 84->128)
    wf1_ref: (5, 128, 128)   fc1 weight split per pooled row p (K 80->128, N 120->128)
    wf2_ref: (128, 128)      fc2 (K 120->128, N 84->128)
    wf3_ref: (128, 128)      fc3 (K 84->128,  N 26->128)
    b*_ref : (1, 128)        f32 biases, zero in pad lanes
    o_ref  : (TB, 128)       logits (first 26 lanes meaningful)
    h1_ref : (14, TB, 128)   VMEM scratch: conv1 pooled activations (lanes = q*6 + c)
    h2_ref : (5, TB, 128)    VMEM scratch: conv2 pooled activations (lanes = q*16 + c)
    """
    f32 = jnp.float32

    # ---- conv1 (5x5 valid) + bias + ReLU + 2x2 max-pool -----------------------
    acc = None
    for i in range(5):                                   # row-taps kh = 0..4
        xi = x_ref[pl.ds(i, 28), :, :].reshape(28 * TB, 96).astype(jnp.bfloat16)
        part = jnp.dot(xi, w1_ref[i], preferred_element_type=f32)   # (28*TB, 256)
        acc = part if acc is None else acc + part
    z = acc.reshape(14, 2 * TB, 256)
    z = jnp.maximum(z[:, :TB, :], z[:, TB:, :])          # H-pool: rows 2p vs 2p+1
    z = jnp.maximum(z[:, :, :128], z[:, :, 128:])        # W-pool: phase dw=0 vs dw=1
    h1_ref[...] = jnp.maximum(z + b1_ref[...], 0.0)      # bias + ReLU (commute with max)

    # ---- conv2 (5x5 valid) + bias + ReLU + 2x2 max-pool -----------------------
    acc = None
    for i in range(5):
        hi = h1_ref[pl.ds(i, 10), :, :].reshape(10 * TB, 128).astype(jnp.bfloat16)
        part = jnp.dot(hi, w2_ref[i], preferred_element_type=f32)   # (10*TB, 256)
        acc = part if acc is None else acc + part
    z = acc.reshape(5, 2 * TB, 256)
    z = jnp.maximum(z[:, :TB, :], z[:, TB:, :])
    z = jnp.maximum(z[:, :, :128], z[:, :, 128:])
    h2_ref[...] = jnp.maximum(z + b2_ref[...], 0.0)

    # ---- fc1 (ReLU) -> fc2 (ReLU) -> fc3 --------------------------------------
    acc = None
    for p in range(5):                                   # flatten over pooled rows
        part = jnp.dot(h2_ref[p].astype(jnp.bfloat16), wf1_ref[p],
                       preferred_element_type=f32)       # (TB, 128)
        acc = part if acc is None else acc + part
    h = jnp.maximum(acc + bf1_ref[...], 0.0)
    h = jnp.maximum(jnp.dot(h.astype(jnp.bfloat16), wf2_ref[...],
                            preferred_element_type=f32) + bf2_ref[...], 0.0)
    o_ref[...] = jnp.dot(h.astype(jnp.bfloat16), wf3_ref[...],
                         preferred_element_type=f32) + bf3_ref[...]


# ------------------------------- weight prep --------------------------------

def _conv_tap_matrices(w_oihw, w_in, k_pad, n_pad):
    """(Cout,Cin,KH,KW) -> (KH, k_pad, 2*n_pad) merged-phase block-Toeplitz matrices.

    Row-tap i, W-pool phase dw: maps input-row lanes (w*Cin+ci) to pooled
    columns (q*Cout+co) for conv columns ow = 2q+dw; phase dw occupies lanes
    [dw*n_pad, dw*n_pad + POW*Cout), the rest are exact zeros.
    """
    cout, cin, kh, kw = (int(s) for s in w_oihw.shape)
    ow = w_in - kw + 1
    pow_ = ow // 2
    k_dim = w_in * cin
    n_dim = pow_ * cout
    q = jnp.arange(pow_)
    taps = []
    for i in range(kh):
        phases = []
        for dw in range(2):
            t = jnp.zeros((w_in, cin, pow_, cout), jnp.float32)
            for j in range(kw):
                val = jnp.broadcast_to(
                    jnp.transpose(w_oihw[:, :, i, j])[None, :, :], (pow_, cin, cout))
                t = t.at[2 * q + dw + j, :, q, :].add(val)
            tm = t.reshape(k_dim, n_dim)
            tm = jnp.pad(tm, ((0, k_pad - k_dim), (0, n_pad - n_dim)))
            phases.append(tm)
        taps.append(jnp.concatenate(phases, axis=1))     # (k_pad, 2*n_pad)
    return jnp.stack(taps, axis=0)                       # (kh, k_pad, 2*n_pad)


def prepare_params(p):
    """Pre-layout weights: bf16 MXU operands, f32 biases, all lane dims 128-aligned."""
    bf16 = jnp.bfloat16
    c1_w = _conv_tap_matrices(p["conv1_w"], w_in=32, k_pad=96, n_pad=128)    # (5, 96, 256)
    c2_w = _conv_tap_matrices(p["conv2_w"], w_in=14, k_pad=128, n_pad=128)   # (5, 128, 256)
    c1_b = jnp.zeros((1, 128), jnp.float32).at[0, :14 * 6].set(jnp.tile(p["conv1_b"], 14))
    c2_b = jnp.zeros((1, 128), jnp.float32).at[0, :5 * 16].set(jnp.tile(p["conv2_b"], 5))
    # fc1: torch flatten index c*25 + p*5 + q  ->  our layout [p, q*16 + c].
    fc1_w = jnp.transpose(p["fc1_w"].reshape(120, 16, 5, 5), (2, 3, 1, 0)).reshape(5, 80, 120)
    fc1_w = jnp.pad(fc1_w, ((0, 0), (0, 48), (0, 8)))                        # (5, 128, 128)
    fc1_b = jnp.pad(p["fc1_b"], (0, 8)).reshape(1, 128)
    fc2_w = jnp.pad(p["fc2_w"].T, ((0, 8), (0, 44)))                         # (128, 128)
    fc2_b = jnp.pad(p["fc2_b"], (0, 44)).reshape(1, 128)
    fc3_w = jnp.pad(p["fc3_w"].T, ((0, 44), (0, 102)))                       # (128, 128)
    fc3_b = jnp.pad(p["fc3_b"], (0, 102)).reshape(1, 128)
    return {
        "c1_w": c1_w.astype(bf16), "c1_b": c1_b,
        "c2_w": c2_w.astype(bf16), "c2_b": c2_b,
        "fc1_w": fc1_w.astype(bf16), "fc1_b": fc1_b,
        "fc2_w": fc2_w.astype(bf16), "fc2_b": fc2_b,
        "fc3_w": fc3_w.astype(bf16), "fc3_b": fc3_b,
    }


def init_params(key):
    """Deterministic synthetic params with PyTorch default-init-style fan-in scaling."""
    ks = jax.random.split(key, 10)

    def u(k, shape, fan_in):
        bound = 1.0 / jnp.sqrt(float(fan_in))
        return jax.random.uniform(k, shape, jnp.float32, -bound, bound)

    return {
        "conv1_w": u(ks[0], (6, 3, 5, 5), 3 * 5 * 5),
        "conv1_b": u(ks[1], (6,), 3 * 5 * 5),
        "conv2_w": u(ks[2], (16, 6, 5, 5), 6 * 5 * 5),
        "conv2_b": u(ks[3], (16,), 6 * 5 * 5),
        "fc1_w": u(ks[4], (120, 400), 400),
        "fc1_b": u(ks[5], (120,), 400),
        "fc2_w": u(ks[6], (84, 120), 120),
        "fc2_b": u(ks[7], (84,), 120),
        "fc3_w": u(ks[8], (26, 84), 84),
        "fc3_b": u(ks[9], (26,), 84),
    }


# ------------------------------- forward pass --------------------------------

def net_forward(x_nchw, prep, *, tile_b=64):
    """x_nchw: (B, 3, 32, 32) f32 -> (B, 26) f32 logits.

    tile_b: batch tile per grid step (multiple of 8).  Sweep per generation:
    64-256 is fine on v5e/v6e/v7x; keep the number of grid steps >= 2 (and
    ideally even) on v7x so both TensorCores are used.
    """
    B, C, H, W = x_nchw.shape
    assert (C, H, W) == (3, 32, 32), "Net geometry is fixed by fc1 = Linear(16*5*5, 120)"
    # NCHW -> (H, B, W*C): H-major rows so every in-kernel row-tap slice collapses
    # to a dense (rows = h*TB + b) matmul operand without relayout.
    x = jnp.transpose(x_nchw, (2, 0, 3, 1)).reshape(H, B, W * C).astype(jnp.float32)

    TB = _round_up(min(int(tile_b), _round_up(B, 8)), 8)
    Bp = _round_up(B, TB)
    if Bp != B:
        x = jnp.pad(x, ((0, 0), (0, Bp - B), (0, 0)))

    kernel = functools.partial(_net_kernel, TB=TB)
    out = pl.pallas_call(
        kernel,
        out_shape=jax.ShapeDtypeStruct((Bp, 128), jnp.float32),
        grid=(Bp // TB,),
        in_specs=[
            pl.BlockSpec((H, TB, W * C), lambda b: (0, b, 0)),     # input tile
            pl.BlockSpec((5, 96, 256), lambda b: (0, 0, 0)),       # conv1 Toeplitz
            pl.BlockSpec((1, 128), lambda b: (0, 0)),
            pl.BlockSpec((5, 128, 256), lambda b: (0, 0, 0)),      # conv2 Toeplitz
            pl.BlockSpec((1, 128), lambda b: (0, 0)),
            pl.BlockSpec((5, 128, 128), lambda b: (0, 0, 0)),      # fc1
            pl.BlockSpec((1, 128), lambda b: (0, 0)),
            pl.BlockSpec((128, 128), lambda b: (0, 0)),            # fc2
            pl.BlockSpec((1, 128), lambda b: (0, 0)),
            pl.BlockSpec((128, 128), lambda b: (0, 0)),            # fc3
            pl.BlockSpec((1, 128), lambda b: (0, 0)),
        ],
        out_specs=pl.BlockSpec((TB, 128), lambda b: (b, 0)),
        scratch_shapes=[
            pltpu.VMEM((14, TB, 128), jnp.float32),   # conv1 pooled activations
            pltpu.VMEM((5, TB, 128), jnp.float32),    # conv2 pooled activations
        ],
        compiler_params=pltpu.CompilerParams(
            dimension_semantics=("parallel",),
            vmem_limit_bytes=32 * 1024 * 1024,
        ),
    )(x, prep["c1_w"], prep["c1_b"], prep["c2_w"], prep["c2_b"],
      prep["fc1_w"], prep["fc1_b"], prep["fc2_w"], prep["fc2_b"],
      prep["fc3_w"], prep["fc3_b"])
    return out[:B, :26]


if __name__ == "__main__":
    key = jax.random.PRNGKey(0)
    k_params, k_x = jax.random.split(key)
    params = init_params(k_params)
    prep = prepare_params(params)
    # Smallest input consistent with fc1 = Linear(16*5*5, 120): (B, 3, 32, 32).
    x = jax.random.normal(k_x, (2, 3, 32, 32), dtype=jnp.float32)

    fwd = jax.jit(net_forward)
    out = jax.block_until_ready(fwd(x, prep))
    assert out.shape == (2, 26)
    print("KERNEL_OK")
</pallas_src>

<mosaic_0001>
module attributes {stable_mosaic.version = 11 : i64} {
  func.func @_net_kernel(%arg0: i32, %arg1: memref<32x8x96xf32, #tpu.memory_space<vmem>>, %arg2: memref<5x96x256xbf16, #tpu.memory_space<vmem>>, %arg3: memref<1x128xf32, #tpu.memory_space<vmem>>, %arg4: memref<5x128x256xbf16, #tpu.memory_space<vmem>>, %arg5: memref<1x128xf32, #tpu.memory_space<vmem>>, %arg6: memref<5x128x128xbf16, #tpu.memory_space<vmem>>, %arg7: memref<1x128xf32, #tpu.memory_space<vmem>>, %arg8: memref<128x128xbf16, #tpu.memory_space<vmem>>, %arg9: memref<1x128xf32, #tpu.memory_space<vmem>>, %arg10: memref<128x128xbf16, #tpu.memory_space<vmem>>, %arg11: memref<1x128xf32, #tpu.memory_space<vmem>>, %arg12: memref<8x128xf32, #tpu.memory_space<vmem>>, %arg13: memref<14x8x128xf32, #tpu.memory_space<vmem>>, %arg14: memref<5x8x128xf32, #tpu.memory_space<vmem>>) attributes {dimension_semantics = [#tpu.dimension_semantics<parallel>], iteration_bounds = array<i64: 1>, scalar_prefetch = 0 : i64, scratch_operands = 2 : i64, tpu.core_type = #tpu.core_type<tc>, window_params = [{transform_indices = @transform_0, window_bounds = array<i64: 32, 8, 96>}, {pipeline_mode = #tpu.pipeline_mode<synchronous>, transform_indices = @transform_1, window_bounds = array<i64: 5, 96, 256>}, {pipeline_mode = #tpu.pipeline_mode<synchronous>, transform_indices = @transform_2, window_bounds = array<i64: 1, 128>}, {pipeline_mode = #tpu.pipeline_mode<synchronous>, transform_indices = @transform_3, window_bounds = array<i64: 5, 128, 256>}, {pipeline_mode = #tpu.pipeline_mode<synchronous>, transform_indices = @transform_4, window_bounds = array<i64: 1, 128>}, {pipeline_mode = #tpu.pipeline_mode<synchronous>, transform_indices = @transform_5, window_bounds = array<i64: 5, 128, 128>}, {pipeline_mode = #tpu.pipeline_mode<synchronous>, transform_indices = @transform_6, window_bounds = array<i64: 1, 128>}, {pipeline_mode = #tpu.pipeline_mode<synchronous>, transform_indices = @transform_7, window_bounds = array<i64: 128, 128>}, {pipeline_mode = #tpu.pipeline_mode<synchronous>, transform_indices = @transform_8, window_bounds = array<i64: 1, 128>}, {pipeline_mode = #tpu.pipeline_mode<synchronous>, transform_indices = @transform_9, window_bounds = array<i64: 128, 128>}, {pipeline_mode = #tpu.pipeline_mode<synchronous>, transform_indices = @transform_10, window_bounds = array<i64: 1, 128>}, {transform_indices = @transform_11, window_bounds = array<i64: 8, 128>}]} {
    %c0 = arith.constant 0 : index
    %c0_0 = arith.constant 0 : index
    %c0_1 = arith.constant 0 : index
    %0 = vector.load %arg1[%c0, %c0_0, %c0_1] : memref<32x8x96xf32, #tpu.memory_space<vmem>>, vector<28x8x96xf32>
    %1 = vector.shape_cast %0 : vector<28x8x96xf32> to vector<224x96xf32>
    %2 = arith.truncf %1 : vector<224x96xf32> to vector<224x96xbf16>
    %c0_2 = arith.constant 0 : index
    %c0_3 = arith.constant 0 : index
    %c0_4 = arith.constant 0 : index
    %3 = vector.load %arg2[%c0_2, %c0_3, %c0_4] : memref<5x96x256xbf16, #tpu.memory_space<vmem>>, vector<1x96x256xbf16>
    %4 = vector.shape_cast %3 : vector<1x96x256xbf16> to vector<96x256xbf16>
    %cst = arith.constant dense<0.000000e+00> : vector<224x256xf32>
    %5 = tpu.matmul %2, %4, %cst {dimension_numbers = #tpu.dot_dimension_numbers<[1], [0], [0], [1], [0, 0, 1, 1], [], []>} : vector<224x96xbf16>, vector<96x256xbf16>, vector<224x256xf32> -> vector<224x256xf32>
    %c1 = arith.constant 1 : index
    %c0_5 = arith.constant 0 : index
    %c0_6 = arith.constant 0 : index
    %6 = vector.load %arg1[%c1, %c0_5, %c0_6] : memref<32x8x96xf32, #tpu.memory_space<vmem>>, vector<28x8x96xf32>
    %7 = vector.shape_cast %6 : vector<28x8x96xf32> to vector<224x96xf32>
    %8 = arith.truncf %7 : vector<224x96xf32> to vector<224x96xbf16>
    %c1_7 = arith.constant 1 : index
    %c0_8 = arith.constant 0 : index
    %c0_9 = arith.constant 0 : index
    %9 = vector.load %arg2[%c1_7, %c0_8, %c0_9] : memref<5x96x256xbf16, #tpu.memory_space<vmem>>, vector<1x96x256xbf16>
    %10 = vector.shape_cast %9 : vector<1x96x256xbf16> to vector<96x256xbf16>
    %cst_10 = arith.constant dense<0.000000e+00> : vector<224x256xf32>
    %11 = tpu.matmul %8, %10, %cst_10 {dimension_numbers = #tpu.dot_dimension_numbers<[1], [0], [0], [1], [0, 0, 1, 1], [], []>} : vector<224x96xbf16>, vector<96x256xbf16>, vector<224x256xf32> -> vector<224x256xf32>
    %12 = arith.addf %5, %11 : vector<224x256xf32>
    %c2 = arith.constant 2 : index
    %c0_11 = arith.constant 0 : index
    %c0_12 = arith.constant 0 : index
    %13 = vector.load %arg1[%c2, %c0_11, %c0_12] : memref<32x8x96xf32, #tpu.memory_space<vmem>>, vector<28x8x96xf32>
    %14 = vector.shape_cast %13 : vector<28x8x96xf32> to vector<224x96xf32>
    %15 = arith.truncf %14 : vector<224x96xf32> to vector<224x96xbf16>
    %c2_13 = arith.constant 2 : index
    %c0_14 = arith.constant 0 : index
    %c0_15 = arith.constant 0 : index
    %16 = vector.load %arg2[%c2_13, %c0_14, %c0_15] : memref<5x96x256xbf16, #tpu.memory_space<vmem>>, vector<1x96x256xbf16>
    %17 = vector.shape_cast %16 : vector<1x96x256xbf16> to vector<96x256xbf16>
    %cst_16 = arith.constant dense<0.000000e+00> : vector<224x256xf32>
    %18 = tpu.matmul %15, %17, %cst_16 {dimension_numbers = #tpu.dot_dimension_numbers<[1], [0], [0], [1], [0, 0, 1, 1], [], []>} : vector<224x96xbf16>, vector<96x256xbf16>, vector<224x256xf32> -> vector<224x256xf32>
    %19 = arith.addf %12, %18 : vector<224x256xf32>
    %c3 = arith.constant 3 : index
    %c0_17 = arith.constant 0 : index
    %c0_18 = arith.constant 0 : index
    %20 = vector.load %arg1[%c3, %c0_17, %c0_18] : memref<32x8x96xf32, #tpu.memory_space<vmem>>, vector<28x8x96xf32>
    %21 = vector.shape_cast %20 : vector<28x8x96xf32> to vector<224x96xf32>
    %22 = arith.truncf %21 : vector<224x96xf32> to vector<224x96xbf16>
    %c3_19 = arith.constant 3 : index
    %c0_20 = arith.constant 0 : index
    %c0_21 = arith.constant 0 : index
    %23 = vector.load %arg2[%c3_19, %c0_20, %c0_21] : memref<5x96x256xbf16, #tpu.memory_space<vmem>>, vector<1x96x256xbf16>
    %24 = vector.shape_cast %23 : vector<1x96x256xbf16> to vector<96x256xbf16>
    %cst_22 = arith.constant dense<0.000000e+00> : vector<224x256xf32>
    %25 = tpu.matmul %22, %24, %cst_22 {dimension_numbers = #tpu.dot_dimension_numbers<[1], [0], [0], [1], [0, 0, 1, 1], [], []>} : vector<224x96xbf16>, vector<96x256xbf16>, vector<224x256xf32> -> vector<224x256xf32>
    %26 = arith.addf %19, %25 : vector<224x256xf32>
    %c4 = arith.constant 4 : index
    %c0_23 = arith.constant 0 : index
    %c0_24 = arith.constant 0 : index
    %27 = vector.load %arg1[%c4, %c0_23, %c0_24] : memref<32x8x96xf32, #tpu.memory_space<vmem>>, vector<28x8x96xf32>
    %28 = vector.shape_cast %27 : vector<28x8x96xf32> to vector<224x96xf32>
    %29 = arith.truncf %28 : vector<224x96xf32> to vector<224x96xbf16>
    %c4_25 = arith.constant 4 : index
    %c0_26 = arith.constant 0 : index
    %c0_27 = arith.constant 0 : index
    %30 = vector.load %arg2[%c4_25, %c0_26, %c0_27] : memref<5x96x256xbf16, #tpu.memory_space<vmem>>, vector<1x96x256xbf16>
    %31 = vector.shape_cast %30 : vector<1x96x256xbf16> to vector<96x256xbf16>
    %cst_28 = arith.constant dense<0.000000e+00> : vector<224x256xf32>
    %32 = tpu.matmul %29, %31, %cst_28 {dimension_numbers = #tpu.dot_dimension_numbers<[1], [0], [0], [1], [0, 0, 1, 1], [], []>} : vector<224x96xbf16>, vector<96x256xbf16>, vector<224x256xf32> -> vector<224x256xf32>
    %33 = arith.addf %26, %32 : vector<224x256xf32>
    %34 = vector.shape_cast %33 : vector<224x256xf32> to vector<14x16x256xf32>
    %35 = vector.extract_strided_slice %34 {offsets = [0, 0, 0], sizes = [14, 8, 256], strides = [1, 1, 1]} : vector<14x16x256xf32> to vector<14x8x256xf32>
    %36 = vector.extract_strided_slice %34 {offsets = [0, 8, 0], sizes = [14, 8, 256], strides = [1, 1, 1]} : vector<14x16x256xf32> to vector<14x8x256xf32>
    %37 = arith.maximumf %35, %36 : vector<14x8x256xf32>
    %38 = vector.extract_strided_slice %37 {offsets = [0, 0, 0], sizes = [14, 8, 128], strides = [1, 1, 1]} : vector<14x8x256xf32> to vector<14x8x128xf32>
    %39 = vector.extract_strided_slice %37 {offsets = [0, 0, 128], sizes = [14, 8, 128], strides = [1, 1, 1]} : vector<14x8x256xf32> to vector<14x8x128xf32>
    %40 = arith.maximumf %38, %39 : vector<14x8x128xf32>
    %c0_29 = arith.constant 0 : index
    %c0_30 = arith.constant 0 : index
    %41 = vector.load %arg3[%c0_29, %c0_30] : memref<1x128xf32, #tpu.memory_space<vmem>>, vector<1x128xf32>
    %42 = vector.shape_cast %41 : vector<1x128xf32> to vector<1x1x128xf32>
    %43 = vector.broadcast %42 : vector<1x1x128xf32> to vector<14x8x128xf32>
    %44 = arith.addf %40, %43 : vector<14x8x128xf32>
    %cst_31 = arith.constant 0.000000e+00 : f32
    %45 = vector.broadcast %cst_31 : f32 to vector<14x8x128xf32>
    %46 = arith.maximumf %44, %45 : vector<14x8x128xf32>
    %c0_32 = arith.constant 0 : index
    %c0_33 = arith.constant 0 : index
    %c0_34 = arith.constant 0 : index
    %47 = vector.load %arg13[%c0_32, %c0_33, %c0_34] : memref<14x8x128xf32, #tpu.memory_space<vmem>>, vector<14x8x128xf32>
    tpu.vector_store %arg13[%c0_32, %c0_33, %c0_34], %46 {strides = array<i32>} : memref<14x8x128xf32, #tpu.memory_space<vmem>>, vector<14x8x128xf32>,
    %c0_35 = arith.constant 0 : index
    %c0_36 = arith.constant 0 : index
    %c0_37 = arith.constant 0 : index
    %48 = vector.load %arg13[%c0_35, %c0_36, %c0_37] : memref<14x8x128xf32, #tpu.memory_space<vmem>>, vector<10x8x128xf32>
    %49 = vector.shape_cast %48 : vector<10x8x128xf32> to vector<80x128xf32>
    %50 = arith.truncf %49 : vector<80x128xf32> to vector<80x128xbf16>
    %c0_38 = arith.constant 0 : index
    %c0_39 = arith.constant 0 : index
    %c0_40 = arith.constant 0 : index
    %51 = vector.load %arg4[%c0_38, %c0_39, %c0_40] : memref<5x128x256xbf16, #tpu.memory_space<vmem>>, vector<1x128x256xbf16>
    %52 = vector.shape_cast %51 : vector<1x128x256xbf16> to vector<128x256xbf16>
    %cst_41 = arith.constant dense<0.000000e+00> : vector<80x256xf32>
    %53 = tpu.matmul %50, %52, %cst_41 {dimension_numbers = #tpu.dot_dimension_numbers<[1], [0], [0], [1], [0, 0, 1, 1], [], []>} : vector<80x128xbf16>, vector<128x256xbf16>, vector<80x256xf32> -> vector<80x256xf32>
    %c1_42 = arith.constant 1 : index
    %c0_43 = arith.constant 0 : index
    %c0_44 = arith.constant 0 : index
    %54 = vector.load %arg13[%c1_42, %c0_43, %c0_44] : memref<14x8x128xf32, #tpu.memory_space<vmem>>, vector<10x8x128xf32>
    %55 = vector.shape_cast %54 : vector<10x8x128xf32> to vector<80x128xf32>
    %56 = arith.truncf %55 : vector<80x128xf32> to vector<80x128xbf16>
    %c1_45 = arith.constant 1 : index
    %c0_46 = arith.constant 0 : index
    %c0_47 = arith.constant 0 : index
    %57 = vector.load %arg4[%c1_45, %c0_46, %c0_47] : memref<5x128x256xbf16, #tpu.memory_space<vmem>>, vector<1x128x256xbf16>
    %58 = vector.shape_cast %57 : vector<1x128x256xbf16> to vector<128x256xbf16>
    %cst_48 = arith.constant dense<0.000000e+00> : vector<80x256xf32>
    %59 = tpu.matmul %56, %58, %cst_48 {dimension_numbers = #tpu.dot_dimension_numbers<[1], [0], [0], [1], [0, 0, 1, 1], [], []>} : vector<80x128xbf16>, vector<128x256xbf16>, vector<80x256xf32> -> vector<80x256xf32>
    %60 = arith.addf %53, %59 : vector<80x256xf32>
    %c2_49 = arith.constant 2 : index
    %c0_50 = arith.constant 0 : index
    %c0_51 = arith.constant 0 : index
    %61 = vector.load %arg13[%c2_49, %c0_50, %c0_51] : memref<14x8x128xf32, #tpu.memory_space<vmem>>, vector<10x8x128xf32>
    %62 = vector.shape_cast %61 : vector<10x8x128xf32> to vector<80x128xf32>
    %63 = arith.truncf %62 : vector<80x128xf32> to vector<80x128xbf16>
    %c2_52 = arith.constant 2 : index
    %c0_53 = arith.constant 0 : index
    %c0_54 = arith.constant 0 : index
    %64 = vector.load %arg4[%c2_52, %c0_53, %c0_54] : memref<5x128x256xbf16, #tpu.memory_space<vmem>>, vector<1x128x256xbf16>
    %65 = vector.shape_cast %64 : vector<1x128x256xbf16> to vector<128x256xbf16>
    %cst_55 = arith.constant dense<0.000000e+00> : vector<80x256xf32>
    %66 = tpu.matmul %63, %65, %cst_55 {dimension_numbers = #tpu.dot_dimension_numbers<[1], [0], [0], [1], [0, 0, 1, 1], [], []>} : vector<80x128xbf16>, vector<128x256xbf16>, vector<80x256xf32> -> vector<80x256xf32>
    %67 = arith.addf %60, %66 : vector<80x256xf32>
    %c3_56 = arith.constant 3 : index
    %c0_57 = arith.constant 0 : index
    %c0_58 = arith.constant 0 : index
    %68 = vector.load %arg13[%c3_56, %c0_57, %c0_58] : memref<14x8x128xf32, #tpu.memory_space<vmem>>, vector<10x8x128xf32>
    %69 = vector.shape_cast %68 : vector<10x8x128xf32> to vector<80x128xf32>
    %70 = arith.truncf %69 : vector<80x128xf32> to vector<80x128xbf16>
    %c3_59 = arith.constant 3 : index
    %c0_60 = arith.constant 0 : index
    %c0_61 = arith.constant 0 : index
    %71 = vector.load %arg4[%c3_59, %c0_60, %c0_61] : memref<5x128x256xbf16, #tpu.memory_space<vmem>>, vector<1x128x256xbf16>
    %72 = vector.shape_cast %71 : vector<1x128x256xbf16> to vector<128x256xbf16>
    %cst_62 = arith.constant dense<0.000000e+00> : vector<80x256xf32>
    %73 = tpu.matmul %70, %72, %cst_62 {dimension_numbers = #tpu.dot_dimension_numbers<[1], [0], [0], [1], [0, 0, 1, 1], [], []>} : vector<80x128xbf16>, vector<128x256xbf16>, vector<80x256xf32> -> vector<80x256xf32>
    %74 = arith.addf %67, %73 : vector<80x256xf32>
    %c4_63 = arith.constant 4 : index
    %c0_64 = arith.constant 0 : index
    %c0_65 = arith.constant 0 : index
    %75 = vector.load %arg13[%c4_63, %c0_64, %c0_65] : memref<14x8x128xf32, #tpu.memory_space<vmem>>, vector<10x8x128xf32>
    %76 = vector.shape_cast %75 : vector<10x8x128xf32> to vector<80x128xf32>
    %77 = arith.truncf %76 : vector<80x128xf32> to vector<80x128xbf16>
    %c4_66 = arith.constant 4 : index
    %c0_67 = arith.constant 0 : index
    %c0_68 = arith.constant 0 : index
    %78 = vector.load %arg4[%c4_66, %c0_67, %c0_68] : memref<5x128x256xbf16, #tpu.memory_space<vmem>>, vector<1x128x256xbf16>
    %79 = vector.shape_cast %78 : vector<1x128x256xbf16> to vector<128x256xbf16>
    %cst_69 = arith.constant dense<0.000000e+00> : vector<80x256xf32>
    %80 = tpu.matmul %77, %79, %cst_69 {dimension_numbers = #tpu.dot_dimension_numbers<[1], [0], [0], [1], [0, 0, 1, 1], [], []>} : vector<80x128xbf16>, vector<128x256xbf16>, vector<80x256xf32> -> vector<80x256xf32>
    %81 = arith.addf %74, %80 : vector<80x256xf32>
    %82 = vector.shape_cast %81 : vector<80x256xf32> to vector<5x16x256xf32>
    %83 = vector.extract_strided_slice %82 {offsets = [0, 0, 0], sizes = [5, 8, 256], strides = [1, 1, 1]} : vector<5x16x256xf32> to vector<5x8x256xf32>
    %84 = vector.extract_strided_slice %82 {offsets = [0, 8, 0], sizes = [5, 8, 256], strides = [1, 1, 1]} : vector<5x16x256xf32> to vector<5x8x256xf32>
    %85 = arith.maximumf %83, %84 : vector<5x8x256xf32>
    %86 = vector.extract_strided_slice %85 {offsets = [0, 0, 0], sizes = [5, 8, 128], strides = [1, 1, 1]} : vector<5x8x256xf32> to vector<5x8x128xf32>
    %87 = vector.extract_strided_slice %85 {offsets = [0, 0, 128], sizes = [5, 8, 128], strides = [1, 1, 1]} : vector<5x8x256xf32> to vector<5x8x128xf32>
    %88 = arith.maximumf %86, %87 : vector<5x8x128xf32>
    %c0_70 = arith.constant 0 : index
    %c0_71 = arith.constant 0 : index
    %89 = vector.load %arg5[%c0_70, %c0_71] : memref<1x128xf32, #tpu.memory_space<vmem>>, vector<1x128xf32>
    %90 = vector.shape_cast %89 : vector<1x128xf32> to vector<1x1x128xf32>
    %91 = vector.broadcast %90 : vector<1x1x128xf32> to vector<5x8x128xf32>
    %92 = arith.addf %88, %91 : vector<5x8x128xf32>
    %cst_72 = arith.constant 0.000000e+00 : f32
    %93 = vector.broadcast %cst_72 : f32 to vector<5x8x128xf32>
    %94 = arith.maximumf %92, %93 : vector<5x8x128xf32>
    %c0_73 = arith.constant 0 : index
    %c0_74 = arith.constant 0 : index
    %c0_75 = arith.constant 0 : index
    %95 = vector.load %arg14[%c0_73, %c0_74, %c0_75] : memref<5x8x128xf32, #tpu.memory_space<vmem>>, vector<5x8x128xf32>
    tpu.vector_store %arg14[%c0_73, %c0_74, %c0_75], %94 {strides = array<i32>} : memref<5x8x128xf32, #tpu.memory_space<vmem>>, vector<5x8x128xf32>,
    %c0_76 = arith.constant 0 : index
    %c0_77 = arith.constant 0 : index
    %c0_78 = arith.constant 0 : index
    %96 = vector.load %arg14[%c0_76, %c0_77, %c0_78] : memref<5x8x128xf32, #tpu.memory_space<vmem>>, vector<1x8x128xf32>
    %97 = vector.shape_cast %96 : vector<1x8x128xf32> to vector<8x128xf32>
    %98 = arith.truncf %97 : vector<8x128xf32> to vector<8x128xbf16>
    %c0_79 = arith.constant 0 : index
    %c0_80 = arith.constant 0 : index
    %c0_81 = arith.constant 0 : index
    %99 = vector.load %arg6[%c0_79, %c0_80, %c0_81] : memref<5x128x128xbf16, #tpu.memory_space<vmem>>, vector<1x128x128xbf16>
    %100 = vector.shape_cast %99 : vector<1x128x128xbf16> to vector<128x128xbf16>
    %cst_82 = arith.constant dense<0.000000e+00> : vector<8x128xf32>
    %101 = tpu.matmul %98, %100, %cst_82 {dimension_numbers = #tpu.dot_dimension_numbers<[1], [0], [0], [1], [0, 0, 1, 1], [], []>} : vector<8x128xbf16>, vector<128x128xbf16>, vector<8x128xf32> -> vector<8x128xf32>
    %c1_83 = arith.constant 1 : index
    %c0_84 = arith.constant 0 : index
    %c0_85 = arith.constant 0 : index
    %102 = vector.load %arg14[%c1_83, %c0_84, %c0_85] : memref<5x8x128xf32, #tpu.memory_space<vmem>>, vector<1x8x128xf32>
    %103 = vector.shape_cast %102 : vector<1x8x128xf32> to vector<8x128xf32>
    %104 = arith.truncf %103 : vector<8x128xf32> to vector<8x128xbf16>
    %c1_86 = arith.constant 1 : index
    %c0_87 = arith.constant 0 : index
    %c0_88 = arith.constant 0 : index
    %105 = vector.load %arg6[%c1_86, %c0_87, %c0_88] : memref<5x128x128xbf16, #tpu.memory_space<vmem>>, vector<1x128x128xbf16>
    %106 = vector.shape_cast %105 : vector<1x128x128xbf16> to vector<128x128xbf16>
    %cst_89 = arith.constant dense<0.000000e+00> : vector<8x128xf32>
    %107 = tpu.matmul %104, %106, %cst_89 {dimension_numbers = #tpu.dot_dimension_numbers<[1], [0], [0], [1], [0, 0, 1, 1], [], []>} : vector<8x128xbf16>, vector<128x128xbf16>, vector<8x128xf32> -> vector<8x128xf32>
    %108 = arith.addf %101, %107 : vector<8x128xf32>
    %c2_90 = arith.constant 2 : index
    %c0_91 = arith.constant 0 : index
    %c0_92 = arith.constant 0 : index
    %109 = vector.load %arg14[%c2_90, %c0_91, %c0_92] : memref<5x8x128xf32, #tpu.memory_space<vmem>>, vector<1x8x128xf32>
    %110 = vector.shape_cast %109 : vector<1x8x128xf32> to vector<8x128xf32>
    %111 = arith.truncf %110 : vector<8x128xf32> to vector<8x128xbf16>
    %c2_93 = arith.constant 2 : index
    %c0_94 = arith.constant 0 : index
    %c0_95 = arith.constant 0 : index
    %112 = vector.load %arg6[%c2_93, %c0_94, %c0_95] : memref<5x128x128xbf16, #tpu.memory_space<vmem>>, vector<1x128x128xbf16>
    %113 = vector.shape_cast %112 : vector<1x128x128xbf16> to vector<128x128xbf16>
    %cst_96 = arith.constant dense<0.000000e+00> : vector<8x128xf32>
    %114 = tpu.matmul %111, %113, %cst_96 {dimension_numbers = #tpu.dot_dimension_numbers<[1], [0], [0], [1], [0, 0, 1, 1], [], []>} : vector<8x128xbf16>, vector<128x128xbf16>, vector<8x128xf32> -> vector<8x128xf32>
    %115 = arith.addf %108, %114 : vector<8x128xf32>
    %c3_97 = arith.constant 3 : index
    %c0_98 = arith.constant 0 : index
    %c0_99 = arith.constant 0 : index
    %116 = vector.load %arg14[%c3_97, %c0_98, %c0_99] : memref<5x8x128xf32, #tpu.memory_space<vmem>>, vector<1x8x128xf32>
    %117 = vector.shape_cast %116 : vector<1x8x128xf32> to vector<8x128xf32>
    %118 = arith.truncf %117 : vector<8x128xf32> to vector<8x128xbf16>
    %c3_100 = arith.constant 3 : index
    %c0_101 = arith.constant 0 : index
    %c0_102 = arith.constant 0 : index
    %119 = vector.load %arg6[%c3_100, %c0_101, %c0_102] : memref<5x128x128xbf16, #tpu.memory_space<vmem>>, vector<1x128x128xbf16>
    %120 = vector.shape_cast %119 : vector<1x128x128xbf16> to vector<128x128xbf16>
    %cst_103 = arith.constant dense<0.000000e+00> : vector<8x128xf32>
    %121 = tpu.matmul %118, %120, %cst_103 {dimension_numbers = #tpu.dot_dimension_numbers<[1], [0], [0], [1], [0, 0, 1, 1], [], []>} : vector<8x128xbf16>, vector<128x128xbf16>, vector<8x128xf32> -> vector<8x128xf32>
    %122 = arith.addf %115, %121 : vector<8x128xf32>
    %c4_104 = arith.constant 4 : index
    %c0_105 = arith.constant 0 : index
    %c0_106 = arith.constant 0 : index
    %123 = vector.load %arg14[%c4_104, %c0_105, %c0_106] : memref<5x8x128xf32, #tpu.memory_space<vmem>>, vector<1x8x128xf32>
    %124 = vector.shape_cast %123 : vector<1x8x128xf32> to vector<8x128xf32>
    %125 = arith.truncf %124 : vector<8x128xf32> to vector<8x128xbf16>
    %c4_107 = arith.constant 4 : index
    %c0_108 = arith.constant 0 : index
    %c0_109 = arith.constant 0 : index
    %126 = vector.load %arg6[%c4_107, %c0_108, %c0_109] : memref<5x128x128xbf16, #tpu.memory_space<vmem>>, vector<1x128x128xbf16>
    %127 = vector.shape_cast %126 : vector<1x128x128xbf16> to vector<128x128xbf16>
    %cst_110 = arith.constant dense<0.000000e+00> : vector<8x128xf32>
    %128 = tpu.matmul %125, %127, %cst_110 {dimension_numbers = #tpu.dot_dimension_numbers<[1], [0], [0], [1], [0, 0, 1, 1], [], []>} : vector<8x128xbf16>, vector<128x128xbf16>, vector<8x128xf32> -> vector<8x128xf32>
    %129 = arith.addf %122, %128 : vector<8x128xf32>
    %c0_111 = arith.constant 0 : index
    %c0_112 = arith.constant 0 : index
    %130 = vector.load %arg7[%c0_111, %c0_112] : memref<1x128xf32, #tpu.memory_space<vmem>>, vector<1x128xf32>
    %131 = vector.broadcast %130 : vector<1x128xf32> to vector<8x128xf32>
    %132 = arith.addf %129, %131 : vector<8x128xf32>
    %cst_113 = arith.constant 0.000000e+00 : f32
    %133 = vector.broadcast %cst_113 : f32 to vector<8x128xf32>
    %134 = arith.maximumf %132, %133 : vector<8x128xf32>
    %135 = arith.truncf %134 : vector<8x128xf32> to vector<8x128xbf16>
    %c0_114 = arith.constant 0 : index
    %c0_115 = arith.constant 0 : index
    %136 = vector.load %arg8[%c0_114, %c0_115] : memref<128x128xbf16, #tpu.memory_space<vmem>>, vector<128x128xbf16>
    %cst_116 = arith.constant dense<0.000000e+00> : vector<8x128xf32>
    %137 = tpu.matmul %135, %136, %cst_116 {dimension_numbers = #tpu.dot_dimension_numbers<[1], [0], [0], [1], [0, 0, 1, 1], [], []>} : vector<8x128xbf16>, vector<128x128xbf16>, vector<8x128xf32> -> vector<8x128xf32>
    %c0_117 = arith.constant 0 : index
    %c0_118 = arith.constant 0 : index
    %138 = vector.load %arg9[%c0_117, %c0_118] : memref<1x128xf32, #tpu.memory_space<vmem>>, vector<1x128xf32>
    %139 = vector.broadcast %138 : vector<1x128xf32> to vector<8x128xf32>
    %140 = arith.addf %137, %139 : vector<8x128xf32>
    %cst_119 = arith.constant 0.000000e+00 : f32
    %141 = vector.broadcast %cst_119 : f32 to vector<8x128xf32>
    %142 = arith.maximumf %140, %141 : vector<8x128xf32>
    %143 = arith.truncf %142 : vector<8x128xf32> to vector<8x128xbf16>
    %c0_120 = arith.constant 0 : index
    %c0_121 = arith.constant 0 : index
    %144 = vector.load %arg10[%c0_120, %c0_121] : memref<128x128xbf16, #tpu.memory_space<vmem>>, vector<128x128xbf16>
    %cst_122 = arith.constant dense<0.000000e+00> : vector<8x128xf32>
    %145 = tpu.matmul %143, %144, %cst_122 {dimension_numbers = #tpu.dot_dimension_numbers<[1], [0], [0], [1], [0, 0, 1, 1], [], []>} : vector<8x128xbf16>, vector<128x128xbf16>, vector<8x128xf32> -> vector<8x128xf32>
    %c0_123 = arith.constant 0 : index
    %c0_124 = arith.constant 0 : index
    %146 = vector.load %arg11[%c0_123, %c0_124] : memref<1x128xf32, #tpu.memory_space<vmem>>, vector<1x128xf32>
    %147 = vector.broadcast %146 : vector<1x128xf32> to vector<8x128xf32>
    %148 = arith.addf %145, %147 : vector<8x128xf32>
    %c0_125 = arith.constant 0 : index
    %c0_126 = arith.constant 0 : index
    %149 = vector.load %arg12[%c0_125, %c0_126] : memref<8x128xf32, #tpu.memory_space<vmem>>, vector<8x128xf32>
    tpu.vector_store %arg12[%c0_125, %c0_126], %148 {strides = array<i32>} : memref<8x128xf32, #tpu.memory_space<vmem>>, vector<8x128xf32>,
    return
  }
  func.func @transform_0(%arg0: i32) -> (i32, i32, i32) {
    %c0_i32 = arith.constant 0 : i32
    %c0_i32_0 = arith.constant 0 : i32
    %c0_i32_1 = arith.constant 0 : i32
    return %c0_i32, %arg0, %c0_i32_0 : i32, i32, i32
  }
  func.func @transform_1(%arg0: i32) -> (i32, i32, i32) {
    %c0_i32 = arith.constant 0 : i32
    %c0_i32_0 = arith.constant 0 : i32
    %c0_i32_1 = arith.constant 0 : i32
    %c0_i32_2 = arith.constant 0 : i32
    return %c0_i32, %c0_i32_0, %c0_i32_1 : i32, i32, i32
  }
  func.func @transform_2(%arg0: i32) -> (i32, i32) {
    %c0_i32 = arith.constant 0 : i32
    %c0_i32_0 = arith.constant 0 : i32
    %c0_i32_1 = arith.constant 0 : i32
    return %c0_i32, %c0_i32_0 : i32, i32
  }
  func.func @transform_3(%arg0: i32) -> (i32, i32, i32) {
    %c0_i32 = arith.constant 0 : i32
    %c0_i32_0 = arith.constant 0 : i32
    %c0_i32_1 = arith.constant 0 : i32
    %c0_i32_2 = arith.constant 0 : i32
    return %c0_i32, %c0_i32_0, %c0_i32_1 : i32, i32, i32
  }
  func.func @transform_4(%arg0: i32) -> (i32, i32) {
    %c0_i32 = arith.constant 0 : i32
    %c0_i32_0 = arith.constant 0 : i32
    %c0_i32_1 = arith.constant 0 : i32
    return %c0_i32, %c0_i32_0 : i32, i32
  }
  func.func @transform_5(%arg0: i32) -> (i32, i32, i32) {
    %c0_i32 = arith.constant 0 : i32
    %c0_i32_0 = arith.constant 0 : i32
    %c0_i32_1 = arith.constant 0 : i32
    %c0_i32_2 = arith.constant 0 : i32
    return %c0_i32, %c0_i32_0, %c0_i32_1 : i32, i32, i32
  }
  func.func @transform_6(%arg0: i32) -> (i32, i32) {
    %c0_i32 = arith.constant 0 : i32
    %c0_i32_0 = arith.constant 0 : i32
    %c0_i32_1 = arith.constant 0 : i32
    return %c0_i32, %c0_i32_0 : i32, i32
  }
  func.func @transform_7(%arg0: i32) -> (i32, i32) {
    %c0_i32 = arith.constant 0 : i32
    %c0_i32_0 = arith.constant 0 : i32
    %c0_i32_1 = arith.constant 0 : i32
    return %c0_i32, %c0_i32_0 : i32, i32
  }
  func.func @transform_8(%arg0: i32) -> (i32, i32) {
    %c0_i32 = arith.constant 0 : i32
    %c0_i32_0 = arith.constant 0 : i32
    %c0_i32_1 = arith.constant 0 : i32
    return %c0_i32, %c0_i32_0 : i32, i32
  }
  func.func @transform_9(%arg0: i32) -> (i32, i32) {
    %c0_i32 = arith.constant 0 : i32
    %c0_i32_0 = arith.constant 0 : i32
    %c0_i32_1 = arith.constant 0 : i32
    return %c0_i32, %c0_i32_0 : i32, i32
  }
  func.func @transform_10(%arg0: i32) -> (i32, i32) {
    %c0_i32 = arith.constant 0 : i32
    %c0_i32_0 = arith.constant 0 : i32
    %c0_i32_1 = arith.constant 0 : i32
    return %c0_i32, %c0_i32_0 : i32, i32
  }
  func.func @transform_11(%arg0: i32) -> (i32, i32) {
    %c0_i32 = arith.constant 0 : i32
    %c0_i32_0 = arith.constant 0 : i32
    return %arg0, %c0_i32 : i32, i32
  }
}

</mosaic_0001>

<bundles_post_ra>
// kernel: net_forward.1
= control target key start
LH: loop header
LB: loop body
LE: loop exit
PB: predicated region body
PF: predicated region fallthrough
CT: control target
= control target key end

     0   :  { %16 = vsyncpa [#allocation5], 0  ;;  %s6428_s0 = inlined_call_operand.vmem [shape: f32[32,8,96], index: 0, kind: input, shape index: {}]   ;;  %s6429_s1 = inlined_call_operand.hbm [shape: bf16[5,96,256], index: 1, kind: input, shape index: {}]   ;;  %s6430_s2 = inlined_call_operand.vmem [shape: f32[1,128], index: 2, kind: input, shape index: {}]   ;;  %s6431_s3 = inlined_call_operand.vmem [shape: bf16[5,128,256], index: 3, kind: input, shape index: {}]   ;;  %s6432_s4 = inlined_call_operand.vmem [shape: f32[1,128], index: 4, kind: input, shape index: {}]   ;;  %s6433_s5 = inlined_call_operand.vmem [shape: bf16[5,128,128], index: 5, kind: input, shape index: {}]   ;;  %s6434_s6 = inlined_call_operand.vmem [shape: f32[1,128], index: 6, kind: input, shape index: {}]   ;;  %s6435_s7 = inlined_call_operand.hbm [shape: bf16[128,128], index: 7, kind: input, shape index: {}]   ;;  %s6436_s8 = inlined_call_operand.vmem [shape: f32[1,128], index: 8, kind: input, shape index: {}]   ;;  %s6437_s9 = inlined_call_operand.hbm [shape: bf16[128,128], index: 9, kind: input, shape index: {}]   ;;  %s6438_s10 = inlined_call_operand.vmem [shape: f32[1,128], index: 10, kind: input, shape index: {}]   ;;  %s6439_s11 = inlined_call_operand.vmem [shape: f32[8,128], index: 11, kind: output, shape index: {}]  }
   0x1   :  { %17 = vsyncpa [#allocation7], 0  ;;  %s5226_s17 = smov [#allocation6]   ;;  %s5156_s21 = scalar_lea.hbm %s6435_s7, 1024 }
   0x2   :  { %s47_s18 = sshll.u32 %s5226_s17, 4  ;;  %p5157_p0 = scmp.ne.s32.totalorder %s6435_s7, %s5156_s21  ;;  %s48_s18 = int_to_ptr.vmem [resolvable:$true] %s47_s18 }
   0x3   :  { %p5160_p1 = scmp.lt.u32.totalorder %s5156_s21, %s6435_s7 }
   0x5   :  { %p5162_p2 = pnand %p5160_p1, %p5157_p0 }
   0x7   :  { %5165 = shalt.err (!%p5162_p2)
}
   0x8   :  { %s5166_s26 = scalar_lea.vmem %s48_s18, 1024  ;;  %p5171_p4 = scmp.lt.s32.totalorder %s48_s18, %s48_s18 }
   0x9   :  { %p5167_p3 = scmp.ne.s32.totalorder %s48_s18, %s5166_s26  ;;  %p5172_p5 = scmp.lt.s32.totalorder %s5166_s26, %s5166_s26 }
   0xb   :  { %p5173_p6 = por %p5172_p5, %p5171_p4 }
   0xd   :  { %p5174_p7 = pnand %p5173_p6, %p5167_p3 }
   0xf   :  { %5177 = shalt.err (!%p5174_p7)
}
  0x10   :  { %s5227_s27 = smov 64   ;;  %s5228_s28 = smov 4  }
  0x11   :  { %53 = dma.hbm_to_vmem [thread:$0]  %s6435_s7, 1024, %s48_s18, [#allocation7], %s5227_s27, %s5227_s27, %s5228_s28  }
  0x12   :  { %s5229_s12 = smov [#allocation4]   ;;  %s5178_s16 = scalar_lea.hbm %s6429_s1, 7680 }
  0x13   :  { %s25_s13 = sshll.u32 %s5229_s12, 4  ;;  %p5179_p8 = scmp.ne.s32.totalorder %s6429_s1, %s5178_s16  ;;  %s26_s13 = int_to_ptr.vmem [resolvable:$true] %s25_s13 }
  0x14   :  { %p5182_p9 = scmp.lt.u32.totalorder %s5178_s16, %s6429_s1 }
  0x16   :  { %p5184_p10 = pnand %p5182_p9, %p5179_p8 }
  0x18   :  { %5187 = shalt.err (!%p5184_p10)
}
  0x19   :  { %s5188_s22 = scalar_lea.vmem %s26_s13, 7680  ;;  %p5193_p12 = scmp.lt.s32.totalorder %s26_s13, %s26_s13 }
  0x1a   :  { %p5189_p11 = scmp.ne.s32.totalorder %s26_s13, %s5188_s22  ;;  %p5194_p13 = scmp.lt.s32.totalorder %s5188_s22, %s5188_s22 }
  0x1c   :  { %p5195_p0 = por %p5194_p13, %p5193_p12 }
  0x1e   :  { %p5196_p1 = pnand %p5195_p0, %p5189_p11 }
  0x20   :  { %5199 = shalt.err (!%p5196_p1)
}
  0x21   :  { %s5230_s7 = smov 128   ;;  %s5231_s18 = smov 8  }
  0x22   :  { %31 = dma.hbm_to_vmem [thread:$0]  %s6429_s1, 7680, %s26_s13, [#allocation5], %s5230_s7, %s5230_s7, %s5231_s18  }
  0x23   :  { %s5232_s25 = smov [#allocation8]   ;;  %s5200_s12 = scalar_lea.hbm %s6437_s9, 1024 }
  0x24   :  { %s61_s26 = sshll.u32 %s5232_s25, 4  ;;  %p5201_p2 = scmp.ne.s32.totalorder %s6437_s9, %s5200_s12  ;;  %s62_s26 = int_to_ptr.vmem [resolvable:$true] %s61_s26 }
  0x25   :  { %p5204_p3 = scmp.lt.u32.totalorder %s5200_s12, %s6437_s9 }
  0x27   :  { %p5206_p4 = pnand %p5204_p3, %p5201_p2 }
  0x29   :  { %5209 = shalt.err (!%p5206_p4)
}
  0x2a   :  { %s5210_s19 = scalar_lea.vmem %s62_s26, 1024  ;;  %p5215_p6 = scmp.lt.s32.totalorder %s62_s26, %s62_s26 }
  0x2b   :  { %p5211_p5 = scmp.ne.s32.totalorder %s62_s26, %s5210_s19  ;;  %p5216_p7 = scmp.lt.s32.totalorder %s5210_s19, %s5210_s19 }
  0x2d   :  { %p5217_p8 = por %p5216_p7, %p5215_p6 }
  0x2f   :  { %p5218_p9 = pnand %p5217_p8, %p5211_p5 }
  0x31   :  { %5221 = shalt.err (!%p5218_p9)
}
  0x32   :  { %67 = dma.hbm_to_vmem [thread:$0]  %s6437_s9, 1024, %s62_s26, [#allocation7], %s5227_s27, %s5227_s27, %s5228_s28  }
  0x33   :  { %5222 = dma.done.wait [#allocation5], 7680  }
  0x34   :  { %5223 = vsyncadd [#allocation5], 4294959616 }
  0x35   :  { %5224 = dma.done.wait [#allocation7], 2048  }
  0x36   :  { %5225 = vsyncadd [#allocation7], 4294965248  ;;  %v5233_v0 = vmov 0   ;;  %v4890_v1 = vld [vmem:[#allocation4 + $0x64] ss:$8 sps:$4 sm:$0xff]   ;;  %v3851_v14 = vld [vmem:[%s6428_s0 + $0x10] sm:$0xff] }
  0x37   :  { %325 = vmatprep.mubr.bf16.mxu0 %v5233_v0  ;;  %365 = vmatprep.mubr.bf16.mxu1 %v5233_v0  ;;  %v4892_v2 = vld [vmem:[#allocation4 + $0x60] ss:$8 sps:$4 sm:$0xff]   ;;  %v4893_v3 = vld [vmem:[#allocation4 + $0x74] ss:$8 sps:$4 sm:$0xff]   ;;  %v4895_v4 = vld [vmem:[#allocation4 + $0x70] ss:$8 sps:$4 sm:$0xff]  }
  0x38   :  { %293 = vmatprep.subr.bf16.mxu0 %v4890_v1  ;;  %4564 = vmatprep.subr.bf16.mxu1 %v4890_v1  ;;  %v4896_v5 = vld [vmem:[#allocation4 + $0x84] ss:$8 sps:$4 sm:$0xff]   ;;  %v4898_v6 = vld [vmem:[#allocation4 + $0x80] ss:$8 sps:$4 sm:$0xff]   ;;  %v4899_v7 = vld [vmem:[#allocation4 + $0x94] ss:$8 sps:$4 sm:$0xff]  }
  0x39   :  { %294 = vmatpush1.bf16.msra.mxu0 %v4892_v2  ;;  %4570 = vmatpush1.bf16.msra.mxu1 %v4892_v2  ;;  %v4901_v8 = vld [vmem:[#allocation4 + $0x90] ss:$8 sps:$4 sm:$0xff]   ;;  %v4902_v9 = vld [vmem:[#allocation4 + $0xa4] ss:$8 sps:$4 sm:$0xff]   ;;  %v4904_v10 = vld [vmem:[#allocation4 + $0xa0] ss:$8 sps:$4 sm:$0xff]  }
  0x3a   :  { %295 = vmatprep.subr.bf16.mxu0 %v4893_v3  ;;  %4565 = vmatprep.subr.bf16.mxu1 %v4893_v3  ;;  %v4905_v11 = vld [vmem:[#allocation4 + $0xb4] ss:$8 sps:$4 sm:$0xff]   ;;  %v4907_v12 = vld [vmem:[#allocation4 + $0xb0] ss:$8 sps:$4 sm:$0xff]   ;;  %v3850_v13 = vld [vmem:[%s6428_s0 + $0x8] sm:$0xff]  ;;  %vm250_vm0 = vcmask 785408  }
  0x3b   :  { %v4910_v15 = vld [vmem:[#allocation4 + $0x4] ss:$8 sps:$4 sm:$0xff]   ;;  %v163_v16 = vpack.c.bf16 %v3851_v14, %v3850_v13  ;;  %v4908_v17 = vld [vmem:[#allocation4] ss:$8 sps:$4 sm:$0xff]   ;;  %v4913_v18 = vld [vmem:[#allocation4 + $0x14] ss:$8 sps:$4 sm:$0xff]  }
  0x3c   :  { %v4911_v19 = vld [vmem:[#allocation4 + $0x10] ss:$8 sps:$4 sm:$0xff]   ;;  %v3853_v21 = vld [vmem:[%s6428_s0 + $0x20] sm:$0xff]  ;;  %v4919_v25 = vld [vmem:[#allocation4 + $0x34] ss:$8 sps:$4 sm:$0xff]   ;;  %vm5235_vm1 = vmmov 0  }
  0x3d   :  { %296 = vmatpush1.bf16.msra.mxu0 %v4895_v4  ;;  %4571 = vmatpush1.bf16.msra.mxu1 %v4895_v4  ;;  %v3852_v20 = vld [vmem:[%s6428_s0 + $0x18] sm:$0xff]  ;;  %v4916_v22 = vld [vmem:[#allocation4 + $0x24] ss:$8 sps:$4 sm:$0xff]   ;;  %v4914_v24 = vld [vmem:[#allocation4 + $0x20] ss:$8 sps:$4 sm:$0xff]  }
  0x3e   :  { %297 = vmatprep.subr.bf16.mxu0 %v4896_v5  ;;  %4566 = vmatprep.subr.bf16.mxu1 %v4896_v5  ;;  %v5354_v23 = vpack.c.bf16 %v3853_v21, %v3852_v20  ;;  %v3854_v26 = vld [vmem:[%s6428_s0 + $0x28] sm:$0xff]  ;;  %v3855_v27 = vld [vmem:[%s6428_s0 + $0x30] sm:$0xff]  ;;  %v3856_v33 = vld [vmem:[%s6428_s0 + $0x38] sm:$0xff]  ;;  %v5386_v45 = vpack.c.bf16 %v3852_v20, %v3851_v14 }
  0x3f   :  { %v4917_v28 = vld [vmem:[#allocation4 + $0x30] ss:$8 sps:$4 sm:$0xff]   ;;  %v4922_v29 = vld [vmem:[#allocation4 + $0x44] ss:$8 sps:$4 sm:$0xff]   ;;  %v4920_v30 = vld [vmem:[#allocation4 + $0x40] ss:$8 sps:$4 sm:$0xff]   ;;  %v5365_v31 = vpack.c.bf16 %v3855_v27, %v3854_v26  ;;  %v5391_v50 = vpack.c.bf16 %v3854_v26, %v3853_v21  ;;  %v5396_v54 = vpack.c.bf16 %v3856_v33, %v3855_v27 }
  0x40   :  { %v4925_v32 = vld [vmem:[#allocation4 + $0x54] ss:$8 sps:$4 sm:$0xff]   ;;  %v3857_v34 = vld [vmem:[%s6428_s0 + $0x40] sm:$0xff]  ;;  %v4923_v35 = vld [vmem:[#allocation4 + $0x50] ss:$8 sps:$4 sm:$0xff]  }
  0x41   :  { %298 = vmatpush1.bf16.msra.mxu0 %v4898_v6  ;;  %4572 = vmatpush1.bf16.msra.mxu1 %v4898_v6  ;;  %v4928_v36 = vld [vmem:[#allocation4 + $0xc4] ss:$8 sps:$4 sm:$0xff]   ;;  %v5376_v37 = vpack.c.bf16 %v3857_v34, %v3856_v33  ;;  %v4926_v39 = vld [vmem:[#allocation4 + $0xc0] ss:$8 sps:$4 sm:$0xff]   ;;  %v4931_v41 = vld [vmem:[#allocation4 + $0xd4] ss:$8 sps:$4 sm:$0xff]  }
  0x42   :  { %299 = vmatprep.subr.bf16.mxu0 %v4899_v7  ;;  %4567 = vmatprep.subr.bf16.mxu1 %v4899_v7  ;;  %v80_v38 = vld [vmem:[%s6428_s0] sm:$0xff]  ;;  %v4929_v42 = vld [vmem:[#allocation4 + $0xd0] ss:$8 sps:$4 sm:$0xff]   ;;  %v4937_v46 = vld [vmem:[#allocation4 + $0xf4] ss:$8 sps:$4 sm:$0xff]  }
  0x43   :  { %v108_v40 = vpack.c.bf16 %v3850_v13, %v80_v38  ;;  %v4934_v43 = vld [vmem:[#allocation4 + $0xe4] ss:$8 sps:$4 sm:$0xff]   ;;  %v4932_v44 = vld [vmem:[#allocation4 + $0xe0] ss:$8 sps:$4 sm:$0xff]   ;;  %v4935_v47 = vld [vmem:[#allocation4 + $0xf0] ss:$8 sps:$4 sm:$0xff]  }
  0x44   :  { %v4940_v48 = vld [vmem:[#allocation4 + $0x104] ss:$8 sps:$4 sm:$0xff]   ;;  %v4938_v49 = vld [vmem:[#allocation4 + $0x100] ss:$8 sps:$4 sm:$0xff]   ;;  %v4943_v51 = vld [vmem:[#allocation4 + $0x114] ss:$8 sps:$4 sm:$0xff]  }
  0x45   :  { %300 = vmatpush1.bf16.msra.mxu0 %v4901_v8  ;;  %4573 = vmatpush1.bf16.msra.mxu1 %v4901_v8  ;;  %v4941_v52 = vld [vmem:[#allocation4 + $0x110] ss:$8 sps:$4 sm:$0xff]   ;;  %v4946_v53 = vld [vmem:[#allocation4 + $0x124] ss:$8 sps:$4 sm:$0xff]   ;;  %v4944_v21 = vld [vmem:[#allocation4 + $0x120] ss:$8 sps:$4 sm:$0xff]  }
  0x46   :  { %301 = vmatprep.subr.bf16.mxu0 %v4902_v9  ;;  %4568 = vmatprep.subr.bf16.mxu1 %v4902_v9  ;;  %v89_v55 = vld [vmem:[%s6428_s0 + $0x48] sm:$0xff]  ;;  %v90_v57 = vld [vmem:[%s6428_s0 + $0x50] sm:$0xff]  ;;  %v5412_v58 = vld [vmem:[%s6428_s0 + $0x58] sm:$0xff] }
  0x47   :  { %v5404_v56 = vpack.c.bf16 %v89_v55, %v3857_v34  ;;  %v5418_v59 = vpack.c.bf16 %v5412_v58, %v90_v57  ;;  %v92_v60 = vld [vmem:[%s6428_s0 + $0x60] sm:$0xff]  ;;  %v5428_v61 = vld [vmem:[%s6428_s0 + $0x68] sm:$0xff]  ;;  %v5437_v63 = vld [vmem:[%s6428_s0 + $0x70] sm:$0xff] }
  0x48   :  { %v5432_v62 = vpack.c.bf16 %v5428_v61, %v92_v60  ;;  %v5442_v1 = vld [vmem:[%s6428_s0 + $0x78] sm:$0xff]  ;;  %v5457_v3 = vld [vmem:[%s6428_s0 + $0x80] sm:$0xff]  ;;  %v5462_v4 = vld [vmem:[%s6428_s0 + $0x88] sm:$0xff] }
  0x49   :  { %302 = vmatpush1.bf16.msra.mxu0 %v4904_v10  ;;  %4574 = vmatpush1.bf16.msra.mxu1 %v4904_v10  ;;  %v5449_v2 = vpack.c.bf16 %v5442_v1, %v5437_v63  ;;  %v5466_v5 = vpack.c.bf16 %v5462_v4, %v5457_v3  ;;  %v5474_v6 = vld [vmem:[%s6428_s0 + $0x90] sm:$0xff]  ;;  %v5479_v7 = vld [vmem:[%s6428_s0 + $0x98] sm:$0xff]  ;;  %v5491_v9 = vld [vmem:[%s6428_s0 + $0xa0] sm:$0xff] }
  0x4a   :  { %303 = vmatprep.subr.bf16.mxu0 %v4905_v11  ;;  %4569 = vmatprep.subr.bf16.mxu1 %v4905_v11  ;;  %v5483_v8 = vpack.c.bf16 %v5479_v7, %v5474_v6  ;;  %v5496_v10 = vld [vmem:[%s6428_s0 + $0xa8] sm:$0xff]  ;;  %v5513_v13 = vld [vmem:[%s6428_s0 + $0xb8] sm:$0xff] }
  0x4b   :  { %v5500_v11 = vpack.c.bf16 %v5496_v10, %v5491_v9  ;;  %v4952_v26 = vld [vmem:[#allocation4 + $0x144] ss:$8 sps:$4 sm:$0xff]   ;;  %v4950_v27 = vld [vmem:[#allocation4 + $0x140] ss:$8 sps:$4 sm:$0xff]   ;;  %v4961_v34 = vld [vmem:[#allocation4 + $0x174] ss:$8 sps:$4 sm:$0xff]  }
  0x4c   :  { %v4956_v33 = vld [vmem:[#allocation4 + $0x160] ss:$8 sps:$4 sm:$0xff]   ;;  %v4964_v38 = vld [vmem:[#allocation4 + $0x184] ss:$8 sps:$4 sm:$0xff]  }
  0x4d   :  { %304 = vmatpush1.bf16.msra.mxu0 %v4907_v12  ;;  %4575 = vmatpush1.bf16.msra.mxu1 %v4907_v12  ;;  %v5508_v12 = vld [vmem:[%s6428_s0 + $0xb0] sm:$0xff] }
  0x4e   :  { %568 = vmatprep.subr.bf16.mxu0 %v4910_v15  ;;  %v5517_v14 = vpack.c.bf16 %v5513_v13, %v5508_v12  ;;  %v5525_v15 = vld [vmem:[%s6428_s0 + $0xc0] sm:$0xff] }
  0x50   :  { %3890 = vmatmul.mubr.msk.bf16.vlgmr.msra.gmra.mrb[0].mxu0 %vm250_vm0, %v163_v16  ;;  %v5530_v16 = vld [vmem:[%s6428_s0 + $0xc8] sm:$0xff] }
  0x51   :  { %569 = vmatpush1.bf16.msra.mxu0 %v4908_v17  ;;  %335 = vmatprep.mubr.bf16.mxu0 %v5233_v0  ;;  %v5534_v17 = vpack.c.bf16 %v5530_v16, %v5525_v15 }
  0x52   :  { %570 = vmatprep.subr.bf16.mxu0 %v4913_v18  ;;  %v5542_v18 = vld [vmem:[%s6428_s0 + $0xd0] sm:$0xff] }
  0x55   :  { %571 = vmatpush1.bf16.msra.mxu0 %v4911_v19  ;;  %v5547_v19 = vld [vmem:[%s6428_s0 + $0xd8] sm:$0xff] }
  0x56   :  { %572 = vmatprep.subr.bf16.mxu0 %v4916_v22  ;;  %v5551_v20 = vpack.c.bf16 %v5547_v19, %v5542_v18  ;;  %v4949_v22 = vld [vmem:[#allocation4 + $0x134] ss:$8 sps:$4 sm:$0xff]  }
  0x58   :  { %3891 = vmatmul.mubr.msk.bf16.gmra.mrb[4].mxu0 %vm250_vm0, %v5354_v23 }
  0x59   :  { %573 = vmatpush1.bf16.msra.mxu0 %v4914_v24  ;;  %345 = vmatprep.mubr.bf16.mxu0 %v5233_v0  ;;  %v4947_v24 = vld [vmem:[#allocation4 + $0x130] ss:$8 sps:$4 sm:$0xff]  }
  0x5a   :  { %574 = vmatprep.subr.bf16.mxu0 %v4919_v25  ;;  %v5559_v25 = vpack.c.bf16 %v90_v57, %v89_v55  ;;  %v4968_v55 = vld [vmem:[#allocation4 + $0x1a0] ss:$8 sps:$4 sm:$0xff]   ;;  %v4973_v57 = vld [vmem:[#allocation4 + $0x1b4] ss:$8 sps:$4 sm:$0xff]  }
  0x5c   :  { %3894 = vmatmul.mubr.msk.bf16.vlgmr.msra.gmra.mrb[0].mxu1 %vm250_vm0, %v5559_v25 }
  0x5d   :  { %575 = vmatpush1.bf16.msra.mxu0 %v4917_v28  ;;  %375 = vmatprep.mubr.bf16.mxu1 %v5233_v0  ;;  %v4955_v28 = vld [vmem:[#allocation4 + $0x154] ss:$8 sps:$4 sm:$0xff]  }
  0x5e   :  { %576 = vmatprep.subr.bf16.mxu0 %v4922_v29  ;;  %v4953_v29 = vld [vmem:[#allocation4 + $0x150] ss:$8 sps:$4 sm:$0xff]  }
  0x60   :  { %3892 = vmatmul.mubr.msk.bf16.gmra.mrb[8].mxu0 %vm250_vm0, %v5365_v31 }
  0x61   :  { %355 = vmatprep.mubr.bf16.mxu0 %v5233_v0  ;;  %577 = vmatpush1.bf16.msra.mxu0 %v4920_v30  ;;  %v5568_v30 = vpack.c.bf16 %v92_v60, %v5412_v58  ;;  %v4971_v58 = vld [vmem:[#allocation4 + $0x1b0] ss:$8 sps:$4 sm:$0xff]   ;;  %v4976_v60 = vld [vmem:[#allocation4 + $0x1c4] ss:$8 sps:$4 sm:$0xff]  }
  0x62   :  { %578 = vmatprep.subr.bf16.mxu0 %v4925_v32  ;;  %v4958_v32 = vld [vmem:[#allocation4 + $0x164] ss:$8 sps:$4 sm:$0xff]  }
  0x64   :  { %3895 = vmatmul.mubr.msk.bf16.gmra.mrb[4].mxu1 %vm250_vm0, %v5568_v30 }
  0x65   :  { %579 = vmatpush1.bf16.msra.mxu0 %v4923_v35  ;;  %385 = vmatprep.mubr.bf16.mxu1 %v5233_v0  ;;  %v4959_v35 = vld [vmem:[#allocation4 + $0x170] ss:$8 sps:$4 sm:$0xff]  }
  0x66   :  { %899 = vmatprep.subr.bf16.mxu0 %v4928_v36  ;;  %v5578_v36 = vpack.c.bf16 %v5437_v63, %v5428_v61  ;;  %v4979_v61 = vld [vmem:[#allocation4 + $0x1d4] ss:$8 sps:$4 sm:$0xff]   ;;  %v4977_v63 = vld [vmem:[#allocation4 + $0x1d0] ss:$8 sps:$4 sm:$0xff]  }
  0x68   :  { %3893 = vmatmul.mubr.msk.bf16.gmra.mrb[12].mxu0 %vm250_vm0, %v5376_v37 }
  0x69   :  { %600 = vmatprep.mubr.bf16.mxu0 %v5233_v0 }
  0x6c   :  { %3896 = vmatmul.mubr.msk.bf16.gmra.mrb[8].mxu1 %vm250_vm0, %v5578_v36 }
  0x6d   :  { %395 = vmatprep.mubr.bf16.mxu1 %v5233_v0 }
  0x70   :  { %3916 = vmatmul.mubr.msk.bf16.vlgmr.msra.gmra.mrb[0].mxu0 %vm250_vm0, %v108_v40  ;;  %v5598_v40 = vpack.c.bf16 %v5474_v6, %v5462_v4  ;;  %v4011_v4 = vld [vmem:[%s6428_s0 + $0xf0] sm:$0xff] }
  0x71   :  { %900 = vmatpush1.bf16.msra.mxu0 %v4926_v39  ;;  %610 = vmatprep.mubr.bf16.mxu0 %v5233_v0  ;;  %v5588_v39 = vpack.c.bf16 %v5457_v3, %v5442_v1  ;;  %v4985_v1 = vld [vmem:[%s6431_s3 + $0x94] ss:$8 sps:$4 sm:$0xff]   ;;  %v4983_v3 = vld [vmem:[%s6431_s3 + $0x90] ss:$8 sps:$4 sm:$0xff]  }
  0x72   :  { %901 = vmatprep.subr.bf16.mxu0 %v4931_v41  ;;  %v5608_v41 = vpack.c.bf16 %v5491_v9, %v5479_v7  ;;  %v4997_v7 = vld [vmem:[%s6431_s3 + $0xd4] ss:$8 sps:$4 sm:$0xff]   ;;  %v4995_v9 = vld [vmem:[%s6431_s3 + $0xd0] ss:$8 sps:$4 sm:$0xff]  }
  0x74   :  { %3897 = vmatmul.mubr.msk.bf16.gmra.mrb[12].mxu1 %vm250_vm0, %v5588_v39 }
  0x75   :  { %902 = vmatpush1.bf16.msra.mxu0 %v4929_v42  ;;  %405 = vmatprep.mubr.bf16.mxu1 %v5233_v0  ;;  %v5618_v42 = vpack.c.bf16 %v5508_v12, %v5496_v10  ;;  %v5000_v10 = vld [vmem:[%s6431_s3 + $0xe4] ss:$8 sps:$4 sm:$0xff]   ;;  %v5003_v12 = vld [vmem:[%s6431_s3 + $0xf4] ss:$8 sps:$4 sm:$0xff]  }
  0x76   :  { %903 = vmatprep.subr.bf16.mxu0 %v4934_v43  ;;  %v5628_v43 = vpack.c.bf16 %v5525_v15, %v5513_v13  ;;  %v5001_v13 = vld [vmem:[%s6431_s3 + $0xf0] ss:$8 sps:$4 sm:$0xff]  }
  0x78   :  { %3917 = vmatmul.mubr.msk.bf16.gmra.mrb[4].mxu0 %vm250_vm0, %v5386_v45 }
  0x79   :  { %620 = vmatprep.mubr.bf16.mxu0 %v5233_v0  ;;  %904 = vmatpush1.bf16.msra.mxu0 %v4932_v44  ;;  %v5638_v44 = vpack.c.bf16 %v5542_v18, %v5530_v16 }
  0x7a   :  { %905 = vmatprep.subr.bf16.mxu0 %v4937_v46 }
  0x7c   :  { %3898 = vmatmul.mubr.msk.bf16.gmra.mrb[16].mxu1 %vm250_vm0, %v5598_v40 }
  0x7d   :  { %906 = vmatpush1.bf16.msra.mxu0 %v4935_v47  ;;  %415 = vmatprep.mubr.bf16.mxu1 %v5233_v0  ;;  %v5667_v47 = vld [vmem:[%s6428_s0 + $0xe8] sm:$0xff] }
  0x7e   :  { %907 = vmatprep.subr.bf16.mxu0 %v4940_v48  ;;  %v1170_v6 = vpack.c.bf16 %v4011_v4, %v5667_v47 }
  0x80   :  { %3918 = vmatmul.mubr.msk.bf16.gmra.mrb[8].mxu0 %vm250_vm0, %v5391_v50 }
  0x81   :  { %630 = vmatprep.mubr.bf16.mxu0 %v5233_v0  ;;  %908 = vmatpush1.bf16.msra.mxu0 %v4938_v49  ;;  %v4962_v49 = vld [vmem:[#allocation4 + $0x180] ss:$8 sps:$4 sm:$0xff]  }
  0x82   :  { %909 = vmatprep.subr.bf16.mxu0 %v4943_v51  ;;  %v4967_v51 = vld [vmem:[#allocation4 + $0x194] ss:$8 sps:$4 sm:$0xff]  }
  0x84   :  { %3899 = vmatmul.mubr.msk.bf16.gmra.mrb[20].mxu1 %vm250_vm0, %v5608_v41 }
  0x85   :  { %910 = vmatpush1.bf16.msra.mxu0 %v4941_v52  ;;  %425 = vmatprep.mubr.bf16.mxu1 %v5233_v0  ;;  %v4965_v52 = vld [vmem:[#allocation4 + $0x190] ss:$8 sps:$4 sm:$0xff]  }
  0x86   :  { %1286 = vmatprep.subr.bf16.mxu0 %v4946_v53  ;;  %v4970_v53 = vld [vmem:[#allocation4 + $0x1a4] ss:$8 sps:$4 sm:$0xff]  }
  0x88   :  { %3919 = vmatmul.mubr.msk.bf16.gmra.mrb[12].mxu0 %vm250_vm0, %v5396_v54 }
  0x89   :  { %640 = vmatprep.mubr.bf16.mxu0 %v5233_v0 }
  0x8c   :  { %3900 = vmatmul.mubr.msk.bf16.gmra.mrb[24].mxu1 %vm250_vm0, %v5618_v42 }
  0x8d   :  { %435 = vmatprep.mubr.bf16.mxu1 %v5233_v0 }
  0x90   :  { %3920 = vmatmul.mubr.msk.bf16.gmra.mrb[16].mxu0 %vm250_vm0, %v5404_v56 }
  0x91   :  { %650 = vmatprep.mubr.bf16.mxu0 %v5233_v0 }
  0x94   :  { %3901 = vmatmul.mubr.msk.bf16.gmra.mrb[28].mxu1 %vm250_vm0, %v5628_v43 }
  0x95   :  { %445 = vmatprep.mubr.bf16.mxu1 %v5233_v0 }
  0x98   :  { %3921 = vmatmul.mubr.msk.bf16.gmra.mrb[20].mxu0 %vm250_vm0, %v5418_v59 }
  0x99   :  { %660 = vmatprep.mubr.bf16.mxu0 %v5233_v0 }
  0x9c   :  { %3902 = vmatmul.mubr.msk.bf16.gmra.mrb[32].mxu1 %vm250_vm0, %v5638_v44 }
  0x9d   :  { %455 = vmatprep.mubr.bf16.mxu1 %v5233_v0 }
  0xa0   :  { %3922 = vmatmul.mubr.msk.bf16.gmra.mrb[24].mxu0 %vm250_vm0, %v5432_v62 }
  0xa1   :  { %670 = vmatprep.mubr.bf16.mxu0 %v5233_v0 }
  0xa8   :  { %3923 = vmatmul.mubr.msk.bf16.gmra.mrb[28].mxu0 %vm250_vm0, %v5449_v2 }
  0xa9   :  { %680 = vmatprep.mubr.bf16.mxu0 %v5233_v0 }
  0xb0   :  { %3924 = vmatmul.mubr.msk.bf16.gmra.mrb[32].mxu0 %vm250_vm0, %v5466_v5 }
  0xb1   :  { %690 = vmatprep.mubr.bf16.mxu0 %v5233_v0 }
  0xb8   :  { %3925 = vmatmul.mubr.msk.bf16.gmra.mrb[36].mxu0 %vm250_vm0, %v5483_v8 }
  0xb9   :  { %700 = vmatprep.mubr.bf16.mxu0 %v5233_v0 }
  0xc0   :  { %3926 = vmatmul.mubr.msk.bf16.gmra.mrb[40].mxu0 %vm250_vm0, %v5500_v11 }
  0xc1   :  { %710 = vmatprep.mubr.bf16.mxu0 %v5233_v0 }
  0xc8   :  { %3927 = vmatmul.mubr.msk.bf16.gmra.mrb[44].mxu0 %vm250_vm0, %v5517_v14 }
  0xc9   :  { %720 = vmatprep.mubr.bf16.mxu0 %v5233_v0 }
  0xd0   :  { %3928 = vmatmul.mubr.msk.bf16.gmra.mrb[48].mxu0 %vm250_vm0, %v5534_v17 }
  0xd1   :  { %730 = vmatprep.mubr.bf16.mxu0 %v5233_v0 }
  0xd8   :  { %3929 = vmatmul.mubr.msk.bf16.gmra.mrb[52].mxu0 %vm250_vm0, %v5551_v20 }
  0xd9   :  { %931 = vmatprep.mubr.bf16.mxu0 %v5233_v0 }
  0xe0   :  { %3970 = vmatmul.mubr.msk.bf16.vlgmr.msra.gmra.mrb[0].mxu0 %vm250_vm0, %v5386_v45  ;;  %v3956_v45 = vld [vmem:[%s6428_s0 + $0xe0] sm:$0xff] }
  0xe1   :  { %1287 = vmatpush1.bf16.msra.mxu0 %v4944_v21  ;;  %941 = vmatprep.mubr.bf16.mxu0 %v5233_v0  ;;  %v5650_v46 = vpack.c.bf16 %v3956_v45, %v5547_v19  ;;  %v5670_v48 = vpack.c.bf16 %v5667_v47, %v3956_v45 }
  0xe2   :  { %1288 = vmatprep.subr.bf16.mxu0 %v4949_v22 }
  0xe3   :  { %3903 = vmatmul.mubr.msk.bf16.gmra.mrb[36].mxu1 %vm250_vm0, %v5650_v46 }
  0xe4   :  { %2169 = vmatprep.mubr.bf16.mxu1 %v5233_v0 }
  0xe5   :  { %1289 = vmatpush1.bf16.msra.mxu0 %v4947_v24 }
  0xe6   :  { %1290 = vmatprep.subr.bf16.mxu0 %v4952_v26 }
  0xe8   :  { %3971 = vmatmul.mubr.msk.bf16.gmra.mrb[4].mxu0 %vm250_vm0, %v5391_v50 }
  0xe9   :  { %951 = vmatprep.mubr.bf16.mxu0 %v5233_v0  ;;  %1291 = vmatpush1.bf16.msra.mxu0 %v4950_v27 }
  0xea   :  { %1292 = vmatprep.subr.bf16.mxu0 %v4955_v28 }
  0xed   :  { %1293 = vmatpush1.bf16.msra.mxu0 %v4953_v29 }
  0xee   :  { %1294 = vmatprep.subr.bf16.mxu0 %v4958_v32 }
  0xf0   :  { %3972 = vmatmul.mubr.msk.bf16.gmra.mrb[8].mxu0 %vm250_vm0, %v5396_v54 }
  0xf1   :  { %961 = vmatprep.mubr.bf16.mxu0 %v5233_v0  ;;  %1295 = vmatpush1.bf16.msra.mxu0 %v4956_v33 }
  0xf2   :  { %1296 = vmatprep.subr.bf16.mxu0 %v4961_v34 }
  0xf5   :  { %1297 = vmatpush1.bf16.msra.mxu0 %v4959_v35 }
  0xf6   :  { %1673 = vmatprep.subr.bf16.mxu0 %v4964_v38 }
  0xf8   :  { %3973 = vmatmul.mubr.msk.bf16.gmra.mrb[12].mxu0 %vm250_vm0, %v5404_v56 }
  0xf9   :  { %971 = vmatprep.mubr.bf16.mxu0 %v5233_v0 }
 0x100   :  { %3974 = vmatmul.mubr.msk.bf16.gmra.mrb[16].mxu0 %vm250_vm0, %v5418_v59 }
 0x101   :  { %981 = vmatprep.mubr.bf16.mxu0 %v5233_v0 }
 0x108   :  { %3975 = vmatmul.mubr.msk.bf16.gmra.mrb[20].mxu0 %vm250_vm0, %v5432_v62 }
 0x109   :  { %991 = vmatprep.mubr.bf16.mxu0 %v5233_v0 }
 0x110   :  { %3976 = vmatmul.mubr.msk.bf16.gmra.mrb[24].mxu0 %vm250_vm0, %v5449_v2 }
 0x111   :  { %1001 = vmatprep.mubr.bf16.mxu0 %v5233_v0 }
 0x118   :  { %3977 = vmatmul.mubr.msk.bf16.gmra.mrb[28].mxu0 %vm250_vm0, %v5466_v5 }
 0x119   :  { %1011 = vmatprep.mubr.bf16.mxu0 %v5233_v0 }
 0x120   :  { %3978 = vmatmul.mubr.msk.bf16.gmra.mrb[32].mxu0 %vm250_vm0, %v5483_v8 }
 0x121   :  { %1021 = vmatprep.mubr.bf16.mxu0 %v5233_v0 }
 0x128   :  { %3979 = vmatmul.mubr.msk.bf16.gmra.mrb[36].mxu0 %vm250_vm0, %v5500_v11 }
 0x129   :  { %1031 = vmatprep.mubr.bf16.mxu0 %v5233_v0 }
 0x130   :  { %3980 = vmatmul.mubr.msk.bf16.gmra.mrb[40].mxu0 %vm250_vm0, %v5517_v14 }
 0x131   :  { %1041 = vmatprep.mubr.bf16.mxu0 %v5233_v0 }
 0x138   :  { %3981 = vmatmul.mubr.msk.bf16.gmra.mrb[44].mxu0 %vm250_vm0, %v5534_v17 }
 0x139   :  { %1051 = vmatprep.mubr.bf16.mxu0 %v5233_v0 }
 0x140   :  { %3982 = vmatmul.mubr.msk.bf16.gmra.mrb[48].mxu0 %vm250_vm0, %v5551_v20 }
 0x141   :  { %1061 = vmatprep.mubr.bf16.mxu0 %v5233_v0 }
 0x148   :  { %3983 = vmatmul.mubr.msk.bf16.gmra.mrb[52].mxu0 %vm250_vm0, %v5670_v48 }
 0x149   :  { %1318 = vmatprep.mubr.bf16.mxu0 %v5233_v0 }
 0x150   :  { %4024 = vmatmul.mubr.msk.bf16.vlgmr.msra.gmra.mrb[0].mxu0 %vm250_vm0, %v5354_v23  ;;  %v4974_v23 = vld [vmem:[#allocation4 + $0x1c0] ss:$8 sps:$4 sm:$0xff]  }
 0x151   :  { %1674 = vmatpush1.bf16.msra.mxu0 %v4962_v49  ;;  %1328 = vmatprep.mubr.bf16.mxu0 %v5233_v0 }
 0x152   :  { %1675 = vmatprep.subr.bf16.mxu0 %v4967_v51 }
 0x155   :  { %1676 = vmatpush1.bf16.msra.mxu0 %v4965_v52 }
 0x156   :  { %1677 = vmatprep.subr.bf16.mxu0 %v4970_v53 }
 0x158   :  { %4025 = vmatmul.mubr.msk.bf16.gmra.mrb[4].mxu0 %vm250_vm0, %v5365_v31  ;;  %v4980_v31 = vld [vmem:[%s6431_s3 + $0x80] ss:$8 sps:$4 sm:$0xff]  }
 0x159   :  { %1338 = vmatprep.mubr.bf16.mxu0 %v5233_v0  ;;  %1678 = vmatpush1.bf16.msra.mxu0 %v4968_v55 }
 0x15a   :  { %1679 = vmatprep.subr.bf16.mxu0 %v4973_v57 }
 0x15d   :  { %1680 = vmatpush1.bf16.msra.mxu0 %v4971_v58 }
 0x15e   :  { %1681 = vmatprep.subr.bf16.mxu0 %v4976_v60 }
 0x160   :  { %4026 = vmatmul.mubr.msk.bf16.gmra.mrb[8].mxu0 %vm250_vm0, %v5376_v37  ;;  %v4982_v37 = vld [vmem:[%s6431_s3 + $0x84] ss:$8 sps:$4 sm:$0xff]  }
 0x161   :  { %1348 = vmatprep.mubr.bf16.mxu0 %v5233_v0  ;;  %1682 = vmatpush1.bf16.msra.mxu0 %v4974_v23 }
 0x162   :  { %1683 = vmatprep.subr.bf16.mxu0 %v4979_v61  ;;  %2137 = vmatprep.subr.bf16.mxu1 %v4982_v37 }
 0x163   :  { %2138 = vmatpush1.bf16.msra.mxu1 %v4980_v31 }
 0x164   :  { %2139 = vmatprep.subr.bf16.mxu1 %v4985_v1 }
 0x165   :  { %1684 = vmatpush1.bf16.msra.mxu0 %v4977_v63 }
 0x167   :  { %2140 = vmatpush1.bf16.msra.mxu1 %v4983_v3 }
 0x168   :  { %4027 = vmatmul.mubr.msk.bf16.gmra.mrb[12].mxu0 %vm250_vm0, %v5559_v25 }
 0x169   :  { %1358 = vmatprep.mubr.bf16.mxu0 %v5233_v0 }
 0x170   :  { %4028 = vmatmul.mubr.msk.bf16.gmra.mrb[16].mxu0 %vm250_vm0, %v5568_v30 }
 0x171   :  { %1368 = vmatprep.mubr.bf16.mxu0 %v5233_v0 }
 0x178   :  { %4029 = vmatmul.mubr.msk.bf16.gmra.mrb[20].mxu0 %vm250_vm0, %v5578_v36  ;;  %v5006_v36 = vld [vmem:[%s6431_s3 + $0x4] ss:$8 sps:$4 sm:$0xff]  }
 0x179   :  { %1378 = vmatprep.mubr.bf16.mxu0 %v5233_v0 }
 0x180   :  { %4030 = vmatmul.mubr.msk.bf16.gmra.mrb[24].mxu0 %vm250_vm0, %v5588_v39 }
 0x181   :  { %1388 = vmatprep.mubr.bf16.mxu0 %v5233_v0 }
 0x188   :  { %4031 = vmatmul.mubr.msk.bf16.gmra.mrb[28].mxu0 %vm250_vm0, %v5598_v40 }
 0x189   :  { %1398 = vmatprep.mubr.bf16.mxu0 %v5233_v0 }
 0x190   :  { %4032 = vmatmul.mubr.msk.bf16.gmra.mrb[32].mxu0 %vm250_vm0, %v5608_v41 }
 0x191   :  { %1408 = vmatprep.mubr.bf16.mxu0 %v5233_v0 }
 0x198   :  { %4033 = vmatmul.mubr.msk.bf16.gmra.mrb[36].mxu0 %vm250_vm0, %v5618_v42 }
 0x199   :  { %1418 = vmatprep.mubr.bf16.mxu0 %v5233_v0 }
 0x1a0   :  { %4034 = vmatmul.mubr.msk.bf16.gmra.mrb[40].mxu0 %vm250_vm0, %v5628_v43 }
 0x1a1   :  { %1428 = vmatprep.mubr.bf16.mxu0 %v5233_v0 }
 0x1a8   :  { %4035 = vmatmul.mubr.msk.bf16.gmra.mrb[44].mxu0 %vm250_vm0, %v5638_v44 }
 0x1a9   :  { %1438 = vmatprep.mubr.bf16.mxu0 %v5233_v0 }
 0x1b0   :  { %4036 = vmatmul.mubr.msk.bf16.gmra.mrb[48].mxu0 %vm250_vm0, %v5650_v46 }
 0x1b1   :  { %1448 = vmatprep.mubr.bf16.mxu0 %v5233_v0 }
 0x1b8   :  { %4037 = vmatmul.mubr.msk.bf16.gmra.mrb[52].mxu0 %vm250_vm0, %v1170_v6 }
 0x1b9   :  { %1705 = vmatprep.mubr.bf16.mxu0 %v5233_v0 }
 0x1c0   :  { %4078 = vmatmul.mubr.msk.bf16.vlgmr.msra.gmra.mrb[0].mxu0 %vm250_vm0, %v5391_v50  ;;  %v4988_v50 = vld [vmem:[%s6431_s3 + $0xa4] ss:$8 sps:$4 sm:$0xff]  }
 0x1c1   :  { %1715 = vmatprep.mubr.bf16.mxu0 %v5233_v0  ;;  %2141 = vmatprep.subr.bf16.mxu1 %v4988_v50 }
 0x1c8   :  { %4079 = vmatmul.mubr.msk.bf16.gmra.mrb[4].mxu0 %vm250_vm0, %v5396_v54  ;;  %v4986_v54 = vld [vmem:[%s6431_s3 + $0xa0] ss:$8 sps:$4 sm:$0xff]  }
 0x1c9   :  { %1725 = vmatprep.mubr.bf16.mxu0 %v5233_v0  ;;  %2142 = vmatpush1.bf16.msra.mxu1 %v4986_v54 }
 0x1d0   :  { %4080 = vmatmul.mubr.msk.bf16.gmra.mrb[8].mxu0 %vm250_vm0, %v5404_v56  ;;  %v4991_v56 = vld [vmem:[%s6431_s3 + $0xb4] ss:$8 sps:$4 sm:$0xff]  }
 0x1d1   :  { %1735 = vmatprep.mubr.bf16.mxu0 %v5233_v0  ;;  %2143 = vmatprep.subr.bf16.mxu1 %v4991_v56  ;;  %v5897_v56 = vld [vmem:[%s6430_s2] ss:$0 sm:$0xff] }
 0x1d8   :  { %4081 = vmatmul.mubr.msk.bf16.gmra.mrb[12].mxu0 %vm250_vm0, %v5418_v59  ;;  %v4989_v59 = vld [vmem:[%s6431_s3 + $0xb0] ss:$8 sps:$4 sm:$0xff]  }
 0x1d9   :  { %1745 = vmatprep.mubr.bf16.mxu0 %v5233_v0  ;;  %2144 = vmatpush1.bf16.msra.mxu1 %v4989_v59 }
 0x1e0   :  { %4082 = vmatmul.mubr.msk.bf16.gmra.mrb[16].mxu0 %vm250_vm0, %v5432_v62  ;;  %v4994_v62 = vld [vmem:[%s6431_s3 + $0xc4] ss:$8 sps:$4 sm:$0xff]  }
 0x1e1   :  { %1755 = vmatprep.mubr.bf16.mxu0 %v5233_v0  ;;  %2145 = vmatprep.subr.bf16.mxu1 %v4994_v62 }
 0x1e8   :  { %4083 = vmatmul.mubr.msk.bf16.gmra.mrb[20].mxu0 %vm250_vm0, %v5449_v2  ;;  %v4992_v2 = vld [vmem:[%s6431_s3 + $0xc0] ss:$8 sps:$4 sm:$0xff]  }
 0x1e9   :  { %1765 = vmatprep.mubr.bf16.mxu0 %v5233_v0  ;;  %2146 = vmatpush1.bf16.msra.mxu1 %v4992_v2 }
 0x1ea   :  { %2147 = vmatprep.subr.bf16.mxu1 %v4997_v7 }
 0x1ed   :  { %2148 = vmatpush1.bf16.msra.mxu1 %v4995_v9 }
 0x1ee   :  { %2149 = vmatprep.subr.bf16.mxu1 %v5000_v10 }
 0x1f0   :  { %4084 = vmatmul.mubr.msk.bf16.gmra.mrb[24].mxu0 %vm250_vm0, %v5466_v5  ;;  %v4065_v5 = vld [vmem:[%s6428_s0 + $0xf8] sm:$0xff] }
 0x1f1   :  { %1775 = vmatprep.mubr.bf16.mxu0 %v5233_v0 }
 0x1f8   :  { %4085 = vmatmul.mubr.msk.bf16.gmra.mrb[28].mxu0 %vm250_vm0, %v5483_v8  ;;  %v1557_v8 = vpack.c.bf16 %v4065_v5, %v4011_v4 }
 0x1f9   :  { %1785 = vmatprep.mubr.bf16.mxu0 %v5233_v0 }
 0x200   :  { %4086 = vmatmul.mubr.msk.bf16.gmra.mrb[32].mxu0 %vm250_vm0, %v5500_v11  ;;  %v4998_v11 = vld [vmem:[%s6431_s3 + $0xe0] ss:$8 sps:$4 sm:$0xff]  }
 0x201   :  { %1795 = vmatprep.mubr.bf16.mxu0 %v5233_v0  ;;  %2150 = vmatpush1.bf16.msra.mxu1 %v4998_v11 }
 0x202   :  { %2151 = vmatprep.subr.bf16.mxu1 %v5003_v12 }
 0x205   :  { %2152 = vmatpush1.bf16.msra.mxu1 %v5001_v13 }
 0x206   :  { %2300 = vmatprep.subr.bf16.mxu1 %v5006_v36 }
 0x208   :  { %4087 = vmatmul.mubr.msk.bf16.gmra.mrb[36].mxu0 %vm250_vm0, %v5517_v14  ;;  %v5811_v14 = vpop.f32.mrb[0].mxu1 }
 0x209   :  { %1805 = vmatprep.mubr.bf16.mxu0 %v5233_v0  ;;  %v5813_v15 = vpop.f32.mrb[1].mxu1 }
 0x20a   :  { %v5815_v16 = vpop.f32.mrb[2].mxu1 }
 0x210   :  { %4088 = vmatmul.mubr.msk.bf16.gmra.mrb[40].mxu0 %vm250_vm0, %v5534_v17  ;;  %v5817_v17 = vpop.f32.mrb[3].mxu1 }
 0x211   :  { %1815 = vmatprep.mubr.bf16.mxu0 %v5233_v0  ;;  %v5819_v18 = vpop.f32.mrb[4].mxu1 }
 0x212   :  { %v5821_v19 = vpop.f32.mrb[5].mxu1 }
 0x218   :  { %4089 = vmatmul.mubr.msk.bf16.gmra.mrb[44].mxu0 %vm250_vm0, %v5551_v20  ;;  %v5823_v20 = vpop.f32.mrb[6].mxu1 }
 0x219   :  { %1825 = vmatprep.mubr.bf16.mxu0 %v5233_v0  ;;  %v5825_v21 = vpop.f32.mrb[7].mxu1 }
 0x21a   :  { %v5827_v22 = vpop.f32.mrb[8].mxu1 }
 0x21b   :  { %v5829_v24 = vpop.f32.mrb[9].mxu1 }
 0x21c   :  { %v5831_v25 = vpop.f32.mrb[10].mxu1 }
 0x21d   :  { %v5833_v26 = vpop.f32.mrb[11].mxu1 }
 0x21e   :  { %v5835_v27 = vpop.f32.mrb[12].mxu1 }
 0x21f   :  { %v5837_v28 = vpop.f32.mrb[13].mxu1 }
 0x220   :  { %4090 = vmatmul.mubr.msk.bf16.gmra.mrb[48].mxu0 %vm250_vm0, %v5670_v48  ;;  %v5839_v29 = vpop.f32.mrb[14].mxu1 }
 0x221   :  { %1835 = vmatprep.mubr.bf16.mxu0 %v5233_v0  ;;  %v5841_v30 = vpop.f32.mrb[15].mxu1 }
 0x222   :  { %v5843_v32 = vpop.f32.mrb[16].mxu1 }
 0x223   :  { %v5845_v33 = vpop.f32.mrb[17].mxu1 }
 0x224   :  { %v5847_v34 = vpop.f32.mrb[18].mxu1 }
 0x225   :  { %v5849_v35 = vpop.f32.mrb[19].mxu1 }
 0x226   :  { %v5854_v38 = vpop.f32.mrb[20].mxu1 }
 0x227   :  { %v5856_v39 = vpop.f32.mrb[21].mxu1 }
 0x228   :  { %4091 = vmatmul.mubr.msk.bf16.gmra.mrb[52].mxu0 %vm250_vm0, %v1557_v8  ;;  %v5858_v40 = vpop.f32.mrb[22].mxu1 }
 0x229   :  { %v5860_v41 = vpop.f32.mrb[23].mxu1 }
 0x22a   :  { %v5862_v42 = vpop.f32.mrb[24].mxu1 }
 0x22b   :  { %v5864_v43 = vpop.f32.mrb[25].mxu1 }
 0x22c   :  { %v5866_v44 = vpop.f32.mrb[26].mxu1 }
 0x22d   :  { %v5868_v45 = vpop.f32.mrb[27].mxu1 }
 0x22e   :  { %v5870_v46 = vpop.f32.mrb[28].mxu1 }
 0x22f   :  { %v5872_v47 = vpop.f32.mrb[29].mxu1 }
 0x230   :  { %v5874_v48 = vpop.f32.mrb[30].mxu1 }
 0x231   :  { %v5876_v49 = vpop.f32.mrb[31].mxu1 }
 0x232   :  { %v5878_v51 = vpop.f32.mrb[32].mxu1 }
 0x233   :  { %v5880_v52 = vpop.f32.mrb[33].mxu1 }
 0x234   :  { %v5882_v53 = vpop.f32.mrb[34].mxu1 }
 0x235   :  { %v5884_v55 = vpop.f32.mrb[35].mxu1 }
 0x236   :  { %v5886_v57 = vpop.f32.mrb[36].mxu1 }
 0x237   :  { %v5888_v58 = vpop.f32.mrb[37].mxu1 }
 0x238   :  { %v5890_v60 = vpop.f32.mrb[38].mxu1 }
 0x239   :  { %v5892_v23 = vpop.f32.mrb[39].mxu1 }
 0x293   :  { %v1707_v61 = vpop.f32.mrb[0].mxu0 }
 0x294   :  { %v1709_v63 = vpop.f32.mrb[1].mxu0 }
 0x295   :  { %v1711_v31 = vpop.f32.mrb[2].mxu0 }
 0x296   :  { %v1902_v37 = vmax.f32 %v1707_v61, %v1711_v31  ;;  %v1713_v1 = vpop.f32.mrb[3].mxu0 }
 0x297   :  { %v1903_v3 = vmax.f32 %v1709_v63, %v1713_v1 }
 0x299   :  { %v1930_v4 = vmax.f32 %v1902_v37, %v1903_v3 }
 0x29b   :  { %v1717_v6 = vpop.f32.mrb[4].mxu0  ;;  %v1951_v5 = vadd.f32 %v5897_v56, %v1930_v4 }
 0x29c   :  { %v1719_v50 = vpop.f32.mrb[5].mxu0 }
 0x29d   :  { %v1721_v54 = vpop.f32.mrb[6].mxu0  ;;  %v1965_v11 = vmax.f32 %v1951_v5, 0.0 }
 0x29e   :  { %v1904_v59 = vmax.f32 %v1717_v6, %v1721_v54  ;;  %v1723_v62 = vpop.f32.mrb[7].mxu0 }
 0x29f   :  { %v1905_v2 = vmax.f32 %v1719_v50, %v1723_v62  ;;  %v5004_v62 = vld [vmem:[%s6431_s3] ss:$8 sps:$4 sm:$0xff]  }
 0x2a1   :  { %v1931_v7 = vmax.f32 %v1904_v59, %v1905_v2 }
 0x2a3   :  { %v1952_v8 = vadd.f32 %v5897_v56, %v1931_v7  ;;  %v1727_v9 = vpop.f32.mrb[8].mxu0  ;;  %v5009_v7 = vld [vmem:[%s6431_s3 + $0x14] ss:$8 sps:$4 sm:$0xff]  }
 0x2a4   :  { %v1729_v10 = vpop.f32.mrb[9].mxu0 }
 0x2a5   :  { %v1966_v12 = vmax.f32 %v1952_v8, 0.0  ;;  %v1731_v13 = vpop.f32.mrb[10].mxu0 }
 0x2a6   :  { %v1906_v36 = vmax.f32 %v1727_v9, %v1731_v13  ;;  %v1733_v61 = vpop.f32.mrb[11].mxu0  ;;  %v5007_v9 = vld [vmem:[%s6431_s3 + $0x10] ss:$8 sps:$4 sm:$0xff]  }
 0x2a7   :  { %v5901_v63 = vpack.c.bf16 %v1966_v12, %v1965_v11  ;;  %v1907_v31 = vmax.f32 %v1729_v10, %v1733_v61 }
 0x2a9   :  { %v1932_v37 = vmax.f32 %v1906_v36, %v1907_v31 }
 0x2ab   :  { %v1953_v1 = vadd.f32 %v5897_v56, %v1932_v37  ;;  %v1737_v3 = vpop.f32.mrb[12].mxu0 }
 0x2ac   :  { %v1739_v6 = vpop.f32.mrb[13].mxu0 }
 0x2ad   :  { %v1967_v50 = vmax.f32 %v1953_v1, 0.0  ;;  %v1741_v4 = vpop.f32.mrb[14].mxu0 }
 0x2ae   :  { %v1908_v54 = vmax.f32 %v1737_v3, %v1741_v4  ;;  %v1743_v59 = vpop.f32.mrb[15].mxu0 }
 0x2af   :  { %v2035_v2 = vpack.c.bf16 %v1967_v50, %v1966_v12  ;;  %v1909_v5 = vmax.f32 %v1739_v6, %v1743_v59  ;;  %v5012_v12 = vld [vmem:[%s6431_s3 + $0x24] ss:$8 sps:$4 sm:$0xff]   ;;  %v5010_v6 = vld [vmem:[%s6431_s3 + $0x20] ss:$8 sps:$4 sm:$0xff]  }
 0x2b1   :  { %v1933_v8 = vmax.f32 %v1908_v54, %v1909_v5  ;;  %2170 = vmatmul.mubr.bf16.vlgmr.msra.gmra.mrb[40].mxu1 %v2035_v2 }
 0x2b2   :  { %2179 = vmatprep.mubr.bf16.mxu1 %v5233_v0  ;;  %2301 = vmatpush1.bf16.msra.mxu1 %v5004_v62 }
 0x2b3   :  { %v1954_v10 = vadd.f32 %v5897_v56, %v1933_v8  ;;  %v1747_v11 = vpop.f32.mrb[16].mxu0  ;;  %2302 = vmatprep.subr.bf16.mxu1 %v5009_v7 }
 0x2b4   :  { %v4576_v13 = vadd.f32 %v1747_v11, %v5811_v14  ;;  %v1749_v36 = vpop.f32.mrb[17].mxu0  ;;  %v5015_v14 = vld [vmem:[%s6431_s3 + $0x34] ss:$8 sps:$4 sm:$0xff]  }
 0x2b5   :  { %v1968_v61 = vmax.f32 %v1954_v10, 0.0  ;;  %v4577_v31 = vadd.f32 %v1749_v36, %v5813_v15  ;;  %v1751_v37 = vpop.f32.mrb[18].mxu0 }
 0x2b6   :  { %v4578_v1 = vadd.f32 %v1751_v37, %v5815_v16  ;;  %v1753_v3 = vpop.f32.mrb[19].mxu0  ;;  %2303 = vmatpush1.bf16.msra.mxu1 %v5007_v9  ;;  %v5013_v16 = vld [vmem:[%s6431_s3 + $0x30] ss:$8 sps:$4 sm:$0xff]  }
 0x2b7   :  { %v4579_v4 = vadd.f32 %v1753_v3, %v5817_v17  ;;  %2304 = vmatprep.subr.bf16.mxu1 %v5012_v12  ;;  %v5928_v54 = vpack.c.bf16 %v1968_v61, %v1967_v50  ;;  %v5018_v17 = vld [vmem:[%s6431_s3 + $0x44] ss:$8 sps:$4 sm:$0xff]   ;;  %v5016_v12 = vld [vmem:[%s6431_s3 + $0x40] ss:$8 sps:$4 sm:$0xff]  }
 0x2b8   :  { %v1910_v59 = vmax.f32 %v4576_v13, %v4578_v1 }
 0x2b9   :  { %v1911_v15 = vmax.f32 %v4577_v31, %v4579_v4 }
 0x2ba   :  { %2305 = vmatpush1.bf16.msra.mxu1 %v5010_v6 }
 0x2bb   :  { %v1934_v62 = vmax.f32 %v1910_v59, %v1911_v15  ;;  %v1757_v2 = vpop.f32.mrb[20].mxu0  ;;  %2306 = vmatprep.subr.bf16.mxu1 %v5015_v14 }
 0x2bc   :  { %v4580_v5 = vadd.f32 %v1757_v2, %v5819_v18  ;;  %v1759_v7 = vpop.f32.mrb[21].mxu0  ;;  %v5021_v18 = vld [vmem:[%s6431_s3 + $0x54] ss:$8 sps:$4 sm:$0xff]  }
 0x2bd   :  { %v4581_v50 = vadd.f32 %v1759_v7, %v5821_v19  ;;  %v1761_v8 = vpop.f32.mrb[22].mxu0  ;;  %v1955_v9 = vadd.f32 %v5897_v56, %v1934_v62  ;;  %v5022_v62 = vld [vmem:[%s6431_s3 + $0x60] ss:$8 sps:$4 sm:$0xff]  }
 0x2be   :  { %v4582_v10 = vadd.f32 %v1761_v8, %v5823_v20  ;;  %v1763_v11 = vpop.f32.mrb[23].mxu0  ;;  %2307 = vmatpush1.bf16.msra.mxu1 %v5013_v16  ;;  %v5019_v20 = vld [vmem:[%s6431_s3 + $0x50] ss:$8 sps:$4 sm:$0xff]  }
 0x2bf   :  { %v4583_v13 = vadd.f32 %v1763_v11, %v5825_v21  ;;  %v1969_v36 = vmax.f32 %v1955_v9, 0.0  ;;  %2308 = vmatprep.subr.bf16.mxu1 %v5018_v17  ;;  %v5024_v21 = vld [vmem:[%s6431_s3 + $0x64] ss:$8 sps:$4 sm:$0xff]  }
 0x2c0   :  { %v1912_v19 = vmax.f32 %v4580_v5, %v4582_v10 }
 0x2c1   :  { %v1913_v31 = vmax.f32 %v4581_v50, %v4583_v13  ;;  %v5947_v37 = vpack.c.bf16 %v1969_v36, %v1968_v61 }
 0x2c2   :  { %2309 = vmatpush1.bf16.msra.mxu1 %v5016_v12 }
 0x2c3   :  { %v1935_v1 = vmax.f32 %v1912_v19, %v1913_v31  ;;  %v1767_v3 = vpop.f32.mrb[24].mxu0  ;;  %2180 = vmatmul.mubr.bf16.gmra.mrb[44].mxu1 %v5947_v37  ;;  %2310 = vmatprep.subr.bf16.mxu1 %v5021_v18 }
 0x2c4   :  { %v4584_v6 = vadd.f32 %v1767_v3, %v5827_v22  ;;  %v1769_v4 = vpop.f32.mrb[25].mxu0  ;;  %2189 = vmatprep.mubr.bf16.mxu1 %v5233_v0  ;;  %v5027_v22 = vld [vmem:[%s6431_s3 + $0x74] ss:$8 sps:$4 sm:$0xff]  }
 0x2c5   :  { %v4585_v61 = vadd.f32 %v1769_v4, %v5829_v24  ;;  %v1771_v14 = vpop.f32.mrb[26].mxu0  ;;  %v1956_v59 = vadd.f32 %v5897_v56, %v1935_v1 }
 0x2c6   :  { %v4586_v15 = vadd.f32 %v1771_v14, %v5831_v25  ;;  %v1773_v16 = vpop.f32.mrb[27].mxu0  ;;  %2311 = vmatpush1.bf16.msra.mxu1 %v5019_v20  ;;  %v5025_v25 = vld [vmem:[%s6431_s3 + $0x70] ss:$8 sps:$4 sm:$0xff]  }
 0x2c7   :  { %v4587_v2 = vadd.f32 %v1773_v16, %v5833_v26  ;;  %v1970_v17 = vmax.f32 %v1956_v59, 0.0  ;;  %2312 = vmatprep.subr.bf16.mxu1 %v5024_v21  ;;  %v5030_v26 = vld [vmem:[%s6431_s3 + $0x104] ss:$8 sps:$4 sm:$0xff]  }
 0x2c8   :  { %v1914_v24 = vmax.f32 %v4584_v6, %v4586_v15 }
 0x2c9   :  { %v1915_v5 = vmax.f32 %v4585_v61, %v4587_v2  ;;  %v5968_v7 = vpack.c.bf16 %v1970_v17, %v1969_v36 }
 0x2ca   :  { %2313 = vmatpush1.bf16.msra.mxu1 %v5022_v62 }
 0x2cb   :  { %v1936_v50 = vmax.f32 %v1914_v24, %v1915_v5  ;;  %v1777_v8 = vpop.f32.mrb[28].mxu0  ;;  %2314 = vmatprep.subr.bf16.mxu1 %v5027_v22 }
 0x2cc   :  { %v4588_v9 = vadd.f32 %v1777_v8, %v5835_v27  ;;  %v1779_v10 = vpop.f32.mrb[29].mxu0 }
 0x2cd   :  { %v4589_v11 = vadd.f32 %v1779_v10, %v5837_v28  ;;  %v1781_v12 = vpop.f32.mrb[30].mxu0  ;;  %v1957_v13 = vadd.f32 %v5897_v56, %v1936_v50 }
 0x2ce   :  { %v4590_v36 = vadd.f32 %v1781_v12, %v5839_v29  ;;  %v1783_v18 = vpop.f32.mrb[31].mxu0  ;;  %2315 = vmatpush1.bf16.msra.mxu1 %v5025_v25 }
 0x2cf   :  { %v4591_v19 = vadd.f32 %v1783_v18, %v5841_v30  ;;  %v1971_v31 = vmax.f32 %v1957_v13, 0.0  ;;  %2496 = vmatprep.subr.bf16.mxu1 %v5030_v26 }
 0x2d0   :  { %v1916_v20 = vmax.f32 %v4588_v9, %v4590_v36 }
 0x2d1   :  { %v1917_v1 = vmax.f32 %v4589_v11, %v4591_v19  ;;  %v5981_v3 = vpack.c.bf16 %v1971_v31, %v1970_v17 }
 0x2d3   :  { %v1937_v21 = vmax.f32 %v1916_v20, %v1917_v1  ;;  %v1787_v27 = vpop.f32.mrb[32].mxu0  ;;  %2190 = vmatmul.mubr.bf16.gmra.mrb[48].mxu1 %v5981_v3 }
 0x2d4   :  { %v4592_v28 = vadd.f32 %v1787_v27, %v5843_v32  ;;  %v1789_v6 = vpop.f32.mrb[33].mxu0  ;;  %2199 = vmatprep.mubr.bf16.mxu1 %v5233_v0 }
 0x2d5   :  { %v4593_v29 = vadd.f32 %v1789_v6, %v5845_v33  ;;  %v1791_v4 = vpop.f32.mrb[34].mxu0  ;;  %v1958_v30 = vadd.f32 %v5897_v56, %v1937_v21 }
 0x2d6   :  { %v4594_v61 = vadd.f32 %v1791_v4, %v5847_v34  ;;  %v1793_v14 = vpop.f32.mrb[35].mxu0 }
 0x2d7   :  { %v4595_v59 = vadd.f32 %v1793_v14, %v5849_v35  ;;  %v1972_v15 = vmax.f32 %v1958_v30, 0.0 }
 0x2d8   :  { %v1918_v16 = vmax.f32 %v4592_v28, %v4594_v61 }
 0x2d9   :  { %v1919_v62 = vmax.f32 %v4593_v29, %v4595_v59  ;;  %v5990_v2 = vpack.c.bf16 %v1972_v15, %v1971_v31 }
 0x2db   :  { %v1938_v17 = vmax.f32 %v1918_v16, %v1919_v62  ;;  %v1797_v32 = vpop.f32.mrb[36].mxu0 }
 0x2dc   :  { %v4596_v22 = vadd.f32 %v1797_v32, %v5854_v38  ;;  %v1799_v24 = vpop.f32.mrb[37].mxu0 }
 0x2dd   :  { %v4597_v33 = vadd.f32 %v1799_v24, %v5856_v39  ;;  %v1801_v5 = vpop.f32.mrb[38].mxu0  ;;  %v1959_v25 = vadd.f32 %v5897_v56, %v1938_v17 }
 0x2de   :  { %v4598_v34 = vadd.f32 %v1801_v5, %v5858_v40  ;;  %v1803_v50 = vpop.f32.mrb[39].mxu0 }
 0x2df   :  { %v4599_v35 = vadd.f32 %v1803_v50, %v5860_v41  ;;  %v1973_v8 = vmax.f32 %v1959_v25, 0.0  ;;  %v5028_v25 = vld [vmem:[%s6431_s3 + $0x100] ss:$8 sps:$4 sm:$0xff]  }
 0x2e0   :  { %v1920_v26 = vmax.f32 %v4596_v22, %v4598_v34  ;;  %v5033_v34 = vld [vmem:[%s6431_s3 + $0x114] ss:$8 sps:$4 sm:$0xff]  }
 0x2e1   :  { %v1921_v9 = vmax.f32 %v4597_v33, %v4599_v35  ;;  %v5997_v10 = vpack.c.bf16 %v1973_v8, %v1972_v15 }
 0x2e3   :  { %v1939_v11 = vmax.f32 %v1920_v26, %v1921_v9  ;;  %v1807_v12 = vpop.f32.mrb[40].mxu0  ;;  %2200 = vmatmul.mubr.bf16.gmra.mrb[52].mxu1 %v5997_v10 }
 0x2e4   :  { %v4600_v38 = vadd.f32 %v1807_v12, %v5862_v42  ;;  %v1809_v39 = vpop.f32.mrb[41].mxu0  ;;  %2209 = vmatprep.mubr.bf16.mxu1 %v5233_v0 }
 0x2e5   :  { %v4601_v13 = vadd.f32 %v1809_v39, %v5864_v43  ;;  %v1811_v40 = vpop.f32.mrb[42].mxu0  ;;  %v1960_v36 = vadd.f32 %v5897_v56, %v1939_v11  ;;  %v5036_v11 = vld [vmem:[%s6431_s3 + $0x124] ss:$8 sps:$4 sm:$0xff]  }
 0x2e6   :  { %v4602_v41 = vadd.f32 %v1811_v40, %v5866_v44  ;;  %v1813_v18 = vpop.f32.mrb[43].mxu0 }
 0x2e7   :  { %v4603_v19 = vadd.f32 %v1813_v18, %v5868_v45  ;;  %v1974_v31 = vmax.f32 %v1960_v36, 0.0  ;;  %v5039_v36 = vld [vmem:[%s6431_s3 + $0x134] ss:$8 sps:$4 sm:$0xff]  }
 0x2e8   :  { %v1922_v20 = vmax.f32 %v4600_v38, %v4602_v41 }
 0x2e9   :  { %v1923_v1 = vmax.f32 %v4601_v13, %v4603_v19  ;;  %v6006_v21 = vpack.c.bf16 %v1974_v31, %v1973_v8  ;;  %v5031_v8 = vld [vmem:[%s6431_s3 + $0x110] ss:$8 sps:$4 sm:$0xff]  }
 0x2eb   :  { %v1940_v27 = vmax.f32 %v1922_v20, %v1923_v1  ;;  %v1817_v42 = vpop.f32.mrb[44].mxu0  ;;  %v5040_v20 = vld [vmem:[%s6431_s3 + $0x140] ss:$8 sps:$4 sm:$0xff]   ;;  %v5045_v1 = vld [vmem:[%s6431_s3 + $0x154] ss:$8 sps:$4 sm:$0xff]  }
 0x2ec   :  { %v4604_v28 = vadd.f32 %v1817_v42, %v5870_v46  ;;  %v1819_v6 = vpop.f32.mrb[45].mxu0  ;;  %v5048_v42 = vld [vmem:[%s6431_s3 + $0x164] ss:$8 sps:$4 sm:$0xff]  }
 0x2ed   :  { %v4605_v43 = vadd.f32 %v1819_v6, %v5872_v47  ;;  %v1821_v29 = vpop.f32.mrb[46].mxu0  ;;  %v1961_v4 = vadd.f32 %v5897_v56, %v1940_v27  ;;  %v5051_v6 = vld [vmem:[%s6431_s3 + $0x174] ss:$8 sps:$4 sm:$0xff]  }
 0x2ee   :  { %v4606_v44 = vadd.f32 %v1821_v29, %v5874_v48  ;;  %v1823_v30 = vpop.f32.mrb[47].mxu0  ;;  %v5054_v29 = vld [vmem:[%s6431_s3 + $0x184] ss:$8 sps:$4 sm:$0xff]  }
 0x2ef   :  { %v4607_v45 = vadd.f32 %v1823_v30, %v5876_v49  ;;  %v1975_v61 = vmax.f32 %v1961_v4, 0.0  ;;  %v5052_v4 = vld [vmem:[%s6431_s3 + $0x180] ss:$8 sps:$4 sm:$0xff]   ;;  %v5055_v30 = vld [vmem:[%s6431_s3 + $0x190] ss:$8 sps:$4 sm:$0xff]  }
 0x2f0   :  { %v1924_v14 = vmax.f32 %v4604_v28, %v4606_v44  ;;  %v5046_v28 = vld [vmem:[%s6431_s3 + $0x160] ss:$8 sps:$4 sm:$0xff]   ;;  %v5057_v44 = vld [vmem:[%s6431_s3 + $0x194] ss:$8 sps:$4 sm:$0xff]  }
 0x2f1   :  { %v1925_v59 = vmax.f32 %v4605_v43, %v4607_v45  ;;  %v6013_v15 = vpack.c.bf16 %v1975_v61, %v1974_v31  ;;  %v5049_v43 = vld [vmem:[%s6431_s3 + $0x170] ss:$8 sps:$4 sm:$0xff]   ;;  %v5060_v45 = vld [vmem:[%s6431_s3 + $0x1a4] ss:$8 sps:$4 sm:$0xff]  }
 0x2f3   :  { %v1941_v16 = vmax.f32 %v1924_v14, %v1925_v59  ;;  %v1827_v62 = vpop.f32.mrb[48].mxu0  ;;  %2210 = vmatmul.mubr.bf16.gmra.mrb[56].mxu1 %v6013_v15  ;;  %v5061_v14 = vld [vmem:[%s6431_s3 + $0x1b0] ss:$8 sps:$4 sm:$0xff]   ;;  %v5066_v59 = vld [vmem:[%s6431_s3 + $0x1c4] ss:$8 sps:$4 sm:$0xff]  }
 0x2f4   :  { %v4608_v46 = vadd.f32 %v1827_v62, %v5878_v51  ;;  %v1829_v47 = vpop.f32.mrb[49].mxu0  ;;  %2332 = vmatprep.mubr.bf16.mxu1 %v5233_v0  ;;  %v5069_v62 = vld [vmem:[%s6431_s3 + $0x1d4] ss:$8 sps:$4 sm:$0xff]  }
 0x2f5   :  { %v4609_v17 = vadd.f32 %v1829_v47, %v5880_v52  ;;  %v1831_v48 = vpop.f32.mrb[50].mxu0  ;;  %v1962_v32 = vadd.f32 %v5897_v56, %v1941_v16  ;;  %v5064_v16 = vld [vmem:[%s6431_s3 + $0x1c0] ss:$8 sps:$4 sm:$0xff]   ;;  %v5072_v47 = vld [vmem:[%s6431_s3 + $0x1e4] ss:$8 sps:$4 sm:$0xff]  }
 0x2f6   :  { %v4610_v49 = vadd.f32 %v1831_v48, %v5882_v53  ;;  %v1833_v22 = vpop.f32.mrb[51].mxu0  ;;  %v5075_v48 = vld [vmem:[%s6431_s3 + $0x1f4] ss:$8 sps:$4 sm:$0xff]  }
 0x2f7   :  { %v4611_v24 = vadd.f32 %v1833_v22, %v5884_v55  ;;  %v1976_v33 = vmax.f32 %v1962_v32, 0.0  ;;  %v5073_v32 = vld [vmem:[%s6431_s3 + $0x1f0] ss:$8 sps:$4 sm:$0xff]   ;;  %v5076_v22 = vld [vmem:[%s6431_s3 + $0x200] ss:$8 sps:$4 sm:$0xff]  }
 0x2f8   :  { %v1926_v5 = vmax.f32 %v4608_v46, %v4610_v49  ;;  %v5067_v46 = vld [vmem:[%s6431_s3 + $0x1d0] ss:$8 sps:$4 sm:$0xff]   ;;  %v5078_v49 = vld [vmem:[%s6431_s3 + $0x204] ss:$8 sps:$4 sm:$0xff]  }
 0x2f9   :  { %v1927_v51 = vmax.f32 %v4609_v17, %v4611_v24  ;;  %v6028_v52 = vpack.c.bf16 %v1976_v33, %v1975_v61  ;;  %v5058_v61 = vld [vmem:[%s6431_s3 + $0x1a0] ss:$8 sps:$4 sm:$0xff]   ;;  %v5081_v24 = vld [vmem:[%s6431_s3 + $0x214] ss:$8 sps:$4 sm:$0xff]  }
 0x2fa   :  { %v5070_v17 = vld [vmem:[%s6431_s3 + $0x1e0] ss:$8 sps:$4 sm:$0xff]  }
 0x2fb   :  { %v1942_v50 = vmax.f32 %v1926_v5, %v1927_v51  ;;  %v1837_v35 = vpop.f32.mrb[52].mxu0  ;;  %2333 = vmatmul.mubr.bf16.vlgmr.msra.gmra.mrb[40].mxu1 %v5901_v63  ;;  %v5084_v5 = vld [vmem:[%s6431_s3 + $0x224] ss:$8 sps:$4 sm:$0xff]   ;;  %v5085_v51 = vld [vmem:[%s6431_s3 + $0x230] ss:$8 sps:$4 sm:$0xff]  }
 0x2fc   :  { %v4612_v53 = vadd.f32 %v1837_v35, %v5886_v57  ;;  %v1839_v55 = vpop.f32.mrb[53].mxu0  ;;  %2497 = vmatpush1.bf16.msra.mxu1 %v5028_v25  ;;  %2342 = vmatprep.mubr.bf16.mxu1 %v5233_v0  ;;  %v5082_v25 = vld [vmem:[%s6431_s3 + $0x220] ss:$8 sps:$4 sm:$0xff]   ;;  %v5091_v35 = vld [vmem:[%s6431_s3 + $0x250] ss:$8 sps:$4 sm:$0xff]  }
 0x2fd   :  { %v4613_v26 = vadd.f32 %v1839_v55, %v5888_v58  ;;  %v1841_v9 = vpop.f32.mrb[54].mxu0  ;;  %2498 = vmatprep.subr.bf16.mxu1 %v5033_v34  ;;  %v1963_v63 = vadd.f32 %v5897_v56, %v1942_v50  ;;  %v5034_v58 = vld [vmem:[%s6431_s3 + $0x120] ss:$8 sps:$4 sm:$0xff]   ;;  %v5090_v34 = vld [vmem:[%s6431_s3 + $0x244] ss:$8 sps:$4 sm:$0xff]  }
 0x2fe   :  { %v4614_v57 = vadd.f32 %v1841_v9, %v5890_v60  ;;  %v1843_v12 = vpop.f32.mrb[55].mxu0  ;;  %v5037_v60 = vld [vmem:[%s6431_s3 + $0x130] ss:$8 sps:$4 sm:$0xff]   ;;  %v5088_v50 = vld [vmem:[%s6431_s3 + $0x240] ss:$8 sps:$4 sm:$0xff]  }
 0x2ff   :  { %v4615_v38 = vadd.f32 %v1843_v12, %v5892_v23  ;;  %v1977_v39 = vmax.f32 %v1963_v63, 0.0  ;;  %v5042_v23 = vld [vmem:[%s6431_s3 + $0x144] ss:$8 sps:$4 sm:$0xff]   ;;  %v5094_v55 = vld [vmem:[%s6431_s3 + $0x260] ss:$8 sps:$4 sm:$0xff]  }
 0x300   :  { %v1928_v13 = vmax.f32 %v4612_v53, %v4614_v57  ;;  %2499 = vmatpush1.bf16.msra.mxu1 %v5031_v8  ;;  %v5096_v53 = vld [vmem:[%s6431_s3 + $0x264] ss:$8 sps:$4 sm:$0xff]   ;;  %v5097_v8 = vld [vmem:[%s6431_s3 + $0x270] ss:$8 sps:$4 sm:$0xff]  }
 0x301   :  { %v1929_v40 = vmax.f32 %v4613_v26, %v4615_v38  ;;  %2500 = vmatprep.subr.bf16.mxu1 %v5036_v11  ;;  %v6049_v41 = vpack.c.bf16 %v1977_v39, %v1976_v33  ;;  %v5079_v33 = vld [vmem:[%s6431_s3 + $0x210] ss:$8 sps:$4 sm:$0xff]   ;;  %v5234_v26 = vmov 0.0   ;;  %v5101_v9 = vld [vmem:[%s6433_s5 + $0x48] sm:$0xff]  }
 0x302   :  { %v5102_v11 = vld [vmem:[%s6433_s5 + $0x50] sm:$0xff]   ;;  %v5105_v63 = vld [vmem:[%s6433_s5 + $0x68] sm:$0xff]  }
 0x303   :  { %v1943_v18 = vmax.f32 %v1928_v13, %v1929_v40  ;;  %2343 = vmatmul.mubr.bf16.gmra.mrb[44].mxu1 %v5928_v54 }
 0x304   :  { %2501 = vmatpush1.bf16.msra.mxu1 %v5034_v58  ;;  %2352 = vmatprep.mubr.bf16.mxu1 %v5233_v0 }
 0x305   :  { %2502 = vmatprep.subr.bf16.mxu1 %v5039_v36  ;;  %v1964_v19 = vadd.f32 %v5897_v56, %v1943_v18  ;;  %v5043_v56 = vld [vmem:[%s6431_s3 + $0x150] ss:$8 sps:$4 sm:$0xff]  }
 0x307   :  { %v1978_v31 = vmax.f32 %v1964_v19, 0.0 }
 0x308   :  { %2503 = vmatpush1.bf16.msra.mxu1 %v5037_v60 }
 0x309   :  { %2504 = vmatprep.subr.bf16.mxu1 %v5042_v23  ;;  %v6066_v27 = vpack.c.bf16 %v1978_v31, %v1977_v39  ;;  %v4237_v31 = vld [vmem:[%s6432_s4] ss:$0 sm:$0xff] }
 0x30b   :  { %2353 = vmatmul.mubr.bf16.gmra.mrb[48].mxu1 %v5968_v7 }
 0x30c   :  { %2505 = vmatpush1.bf16.msra.mxu1 %v5040_v20  ;;  %2362 = vmatprep.mubr.bf16.mxu1 %v5233_v0 }
 0x30d   :  { %2506 = vmatprep.subr.bf16.mxu1 %v5045_v1 }
 0x310   :  { %2507 = vmatpush1.bf16.msra.mxu1 %v5043_v56 }
 0x311   :  { %2508 = vmatprep.subr.bf16.mxu1 %v5048_v42 }
 0x313   :  { %2363 = vmatmul.mubr.bf16.gmra.mrb[52].mxu1 %v5990_v2 }
 0x314   :  { %2372 = vmatprep.mubr.bf16.mxu1 %v5233_v0  ;;  %2509 = vmatpush1.bf16.msra.mxu1 %v5046_v28 }
 0x315   :  { %2510 = vmatprep.subr.bf16.mxu1 %v5051_v6 }
 0x318   :  { %2511 = vmatpush1.bf16.msra.mxu1 %v5049_v43  ;;  %v5108_v43 = vld [vmem:[%s6433_s5] sm:$0xff]  }
 0x319   :  { %2712 = vmatprep.subr.bf16.mxu1 %v5054_v29 }
 0x31b   :  { %2373 = vmatmul.mubr.bf16.gmra.mrb[56].mxu1 %v6006_v21 }
 0x31c   :  { %2528 = vmatprep.mubr.bf16.mxu1 %v5233_v0 }
 0x323   :  { %2529 = vmatmul.mubr.bf16.vlgmr.msra.gmra.mrb[40].mxu1 %v5928_v54  ;;  %v5063_v54 = vld [vmem:[%s6431_s3 + $0x1b4] ss:$8 sps:$4 sm:$0xff]  }
 0x324   :  { %2713 = vmatpush1.bf16.msra.mxu1 %v5052_v4  ;;  %2538 = vmatprep.mubr.bf16.mxu1 %v5233_v0 }
 0x325   :  { %2714 = vmatprep.subr.bf16.mxu1 %v5057_v44 }
 0x328   :  { %2715 = vmatpush1.bf16.msra.mxu1 %v5055_v30  ;;  %v5109_v30 = vld [vmem:[%s6433_s5 + $0x8] sm:$0xff]  }
 0x329   :  { %2716 = vmatprep.subr.bf16.mxu1 %v5060_v45 }
 0x32b   :  { %2539 = vmatmul.mubr.bf16.gmra.mrb[44].mxu1 %v5968_v7 }
 0x32c   :  { %2717 = vmatpush1.bf16.msra.mxu1 %v5058_v61  ;;  %2548 = vmatprep.mubr.bf16.mxu1 %v5233_v0 }
 0x32d   :  { %2718 = vmatprep.subr.bf16.mxu1 %v5063_v54 }
 0x330   :  { %2719 = vmatpush1.bf16.msra.mxu1 %v5061_v14 }
 0x331   :  { %2720 = vmatprep.subr.bf16.mxu1 %v5066_v59 }
 0x333   :  { %2549 = vmatmul.mubr.bf16.gmra.mrb[48].mxu1 %v5990_v2 }
 0x334   :  { %2721 = vmatpush1.bf16.msra.mxu1 %v5064_v16  ;;  %2558 = vmatprep.mubr.bf16.mxu1 %v5233_v0 }
 0x335   :  { %2722 = vmatprep.subr.bf16.mxu1 %v5069_v62  ;;  %v5110_v62 = vld [vmem:[%s6433_s5 + $0x10] sm:$0xff]  }
 0x338   :  { %2723 = vmatpush1.bf16.msra.mxu1 %v5067_v46 }
 0x339   :  { %2724 = vmatprep.subr.bf16.mxu1 %v5072_v47 }
 0x33b   :  { %2559 = vmatmul.mubr.bf16.gmra.mrb[52].mxu1 %v6006_v21 }
 0x33c   :  { %2568 = vmatprep.mubr.bf16.mxu1 %v5233_v0  ;;  %2725 = vmatpush1.bf16.msra.mxu1 %v5070_v17  ;;  %v5111_v17 = vld [vmem:[%s6433_s5 + $0x18] sm:$0xff]  }
 0x33d   :  { %2726 = vmatprep.subr.bf16.mxu1 %v5075_v48 }
 0x340   :  { %2727 = vmatpush1.bf16.msra.mxu1 %v5073_v32 }
 0x341   :  { %2928 = vmatprep.subr.bf16.mxu1 %v5078_v49 }
 0x343   :  { %2569 = vmatmul.mubr.bf16.gmra.mrb[56].mxu1 %v6028_v52 }
 0x344   :  { %2744 = vmatprep.mubr.bf16.mxu1 %v5233_v0 }
 0x34b   :  { %2745 = vmatmul.mubr.bf16.vlgmr.msra.gmra.mrb[40].mxu1 %v5947_v37  ;;  %v5087_v37 = vld [vmem:[%s6431_s3 + $0x234] ss:$8 sps:$4 sm:$0xff]  }
 0x34c   :  { %2929 = vmatpush1.bf16.msra.mxu1 %v5076_v22  ;;  %2754 = vmatprep.mubr.bf16.mxu1 %v5233_v0 }
 0x34d   :  { %2930 = vmatprep.subr.bf16.mxu1 %v5081_v24 }
 0x350   :  { %2931 = vmatpush1.bf16.msra.mxu1 %v5079_v33 }
 0x351   :  { %2932 = vmatprep.subr.bf16.mxu1 %v5084_v5  ;;  %v5112_v5 = vld [vmem:[%s6433_s5 + $0x20] sm:$0xff]  }
 0x353   :  { %2755 = vmatmul.mubr.bf16.gmra.mrb[44].mxu1 %v5981_v3  ;;  %v5093_v3 = vld [vmem:[%s6431_s3 + $0x254] ss:$8 sps:$4 sm:$0xff]  }
 0x354   :  { %2933 = vmatpush1.bf16.msra.mxu1 %v5082_v25  ;;  %2764 = vmatprep.mubr.bf16.mxu1 %v5233_v0 }
 0x355   :  { %2934 = vmatprep.subr.bf16.mxu1 %v5087_v37 }
 0x358   :  { %2935 = vmatpush1.bf16.msra.mxu1 %v5085_v51  ;;  %v5113_v51 = vld [vmem:[%s6433_s5 + $0x28] sm:$0xff]  }
 0x359   :  { %2936 = vmatprep.subr.bf16.mxu1 %v5090_v34 }
 0x35b   :  { %2765 = vmatmul.mubr.bf16.gmra.mrb[48].mxu1 %v5997_v10  ;;  %v5099_v10 = vld [vmem:[%s6431_s3 + $0x274] ss:$8 sps:$4 sm:$0xff]  }
 0x35c   :  { %2937 = vmatpush1.bf16.msra.mxu1 %v5088_v50  ;;  %2774 = vmatprep.mubr.bf16.mxu1 %v5233_v0  ;;  %v5114_v50 = vld [vmem:[%s6433_s5 + $0x30] sm:$0xff]  }
 0x35d   :  { %2938 = vmatprep.subr.bf16.mxu1 %v5093_v3 }
 0x360   :  { %2939 = vmatpush1.bf16.msra.mxu1 %v5091_v35  ;;  %v5115_v35 = vld [vmem:[%s6433_s5 + $0x38] sm:$0xff]  }
 0x361   :  { %2940 = vmatprep.subr.bf16.mxu1 %v5096_v53 }
 0x363   :  { %2775 = vmatmul.mubr.bf16.gmra.mrb[52].mxu1 %v6013_v15  ;;  %v5100_v15 = vld [vmem:[%s6433_s5 + $0x40] sm:$0xff]  }
 0x364   :  { %2784 = vmatprep.mubr.bf16.mxu1 %v5233_v0  ;;  %2941 = vmatpush1.bf16.msra.mxu1 %v5094_v55  ;;  %v5116_v55 = vld [vmem:[%s6433_s5 + $0x80] sm:$0xff]  }
 0x365   :  { %2942 = vmatprep.subr.bf16.mxu1 %v5099_v10 }
 0x368   :  { %2943 = vmatpush1.bf16.msra.mxu1 %v5097_v8  ;;  %v5117_v8 = vld [vmem:[%s6433_s5 + $0x88] sm:$0xff]  }
 0x369   :  { %4424 = vmatprep.subr.bf16.mxu1 %v5234_v26 }
 0x36b   :  { %2785 = vmatmul.mubr.bf16.gmra.mrb[56].mxu1 %v6049_v41 }
 0x36c   :  { %2960 = vmatprep.mubr.bf16.mxu1 %v5233_v0 }
 0x373   :  { %2961 = vmatmul.mubr.bf16.vlgmr.msra.gmra.mrb[40].mxu1 %v5968_v7  ;;  %v5103_v7 = vld [vmem:[%s6433_s5 + $0x58] sm:$0xff]  }
 0x374   :  { %2970 = vmatprep.mubr.bf16.mxu1 %v5233_v0  ;;  %4425 = vmatpush3.bf16.msra.mxu1 %v5100_v15  ;;  %v5118_v15 = vld [vmem:[%s6433_s5 + $0x90] sm:$0xff]  }
 0x375   :  { %4426 = vmatprep.subr.bf16.mxu1 %v5234_v26 }
 0x378   :  { %4427 = vmatpush3.bf16.msra.mxu1 %v5101_v9  ;;  %v5119_v9 = vld [vmem:[%s6433_s5 + $0x98] sm:$0xff]  }
 0x379   :  { %4428 = vmatprep.subr.bf16.mxu1 %v5234_v26 }
 0x37b   :  { %2971 = vmatmul.mubr.bf16.gmra.mrb[44].mxu1 %v5990_v2  ;;  %v5104_v2 = vld [vmem:[%s6433_s5 + $0x60] sm:$0xff]  }
 0x37c   :  { %2980 = vmatprep.mubr.bf16.mxu1 %v5233_v0  ;;  %4429 = vmatpush3.bf16.msra.mxu1 %v5102_v11  ;;  %v5120_v11 = vld [vmem:[%s6433_s5 + $0xa0] sm:$0xff]  }
 0x37d   :  { %4430 = vmatprep.subr.bf16.mxu1 %v5234_v26 }
 0x380   :  { %4431 = vmatpush3.bf16.msra.mxu1 %v5103_v7  ;;  %v5121_v7 = vld [vmem:[%s6433_s5 + $0xa8] sm:$0xff]  }
 0x381   :  { %4432 = vmatprep.subr.bf16.mxu1 %v5234_v26 }
 0x383   :  { %2981 = vmatmul.mubr.bf16.gmra.mrb[48].mxu1 %v6006_v21  ;;  %v5107_v21 = vld [vmem:[%s6433_s5 + $0x78] sm:$0xff]  }
 0x384   :  { %2990 = vmatprep.mubr.bf16.mxu1 %v5233_v0  ;;  %4433 = vmatpush3.bf16.msra.mxu1 %v5104_v2  ;;  %v5122_v2 = vld [vmem:[%s6433_s5 + $0xb0] sm:$0xff]  }
 0x385   :  { %4434 = vmatprep.subr.bf16.mxu1 %v5234_v26 }
 0x388   :  { %4435 = vmatpush3.bf16.msra.mxu1 %v5105_v63  ;;  %v5123_v63 = vld [vmem:[%s6433_s5 + $0xb8] sm:$0xff]  }
 0x389   :  { %4436 = vmatprep.subr.bf16.mxu1 %v5234_v26 }
 0x38b   :  { %2991 = vmatmul.mubr.bf16.gmra.mrb[52].mxu1 %v6028_v52 }
 0x38c   :  { %3000 = vmatprep.mubr.bf16.mxu1 %v5233_v0  ;;  %v5106_v0 = vld [vmem:[%s6433_s5 + $0x70] sm:$0xff]  }
 0x38d   :  { %4437 = vmatpush3.bf16.msra.mxu1 %v5106_v0 }
 0x38e   :  { %4438 = vmatprep.subr.bf16.mxu1 %v5234_v26 }
 0x391   :  { %4439 = vmatpush3.bf16.msra.mxu1 %v5107_v21  ;;  %v5124_v21 = vld [vmem:[%s6433_s5 + $0xc0] sm:$0xff]  }
 0x392   :  { %4444 = vmatprep.subr.bf16.mxu1 %v5234_v26 }
 0x393   :  { %3001 = vmatmul.mubr.bf16.gmra.mrb[56].mxu1 %v6066_v27 }
 0x394   :  { %4440 = vmatprep.mubr.msk.bf16.mxu1 %vm5235_vm1, %v5234_v26 }
 0x446   :  { %v2962_v52 = vpop.f32.mrb[40].mxu1 }
 0x447   :  { %v2964_v57 = vpop.f32.mrb[41].mxu1 }
 0x448   :  { %v2966_v12 = vpop.f32.mrb[42].mxu1 }
 0x449   :  { %v3031_v38 = vmax.f32 %v2962_v52, %v2966_v12  ;;  %v2968_v39 = vpop.f32.mrb[43].mxu1  ;;  %v5126_v12 = vld [vmem:[%s6433_s5 + $0xd0] sm:$0xff]  }
 0x44a   :  { %v3032_v13 = vmax.f32 %v2964_v57, %v2968_v39  ;;  %v5125_v57 = vld [vmem:[%s6433_s5 + $0xc8] sm:$0xff]   ;;  %v5128_v39 = vld [vmem:[%s6433_s5 + $0xe0] sm:$0xff]  }
 0x44c   :  { %v3041_v58 = vmax.f32 %v3031_v38, %v3032_v13  ;;  %v5127_v38 = vld [vmem:[%s6433_s5 + $0xd8] sm:$0xff]   ;;  %v5129_v13 = vld [vmem:[%s6433_s5 + $0xe8] sm:$0xff]  }
 0x44e   :  { %v2972_v40 = vpop.f32.mrb[44].mxu1  ;;  %v3053_v3 = vadd.f32 %v4237_v31, %v3041_v58  ;;  %v5130_v58 = vld [vmem:[%s6433_s5 + $0xf0] sm:$0xff]  }
 0x44f   :  { %v2974_v36 = vpop.f32.mrb[45].mxu1 }
 0x450   :  { %v2976_v41 = vpop.f32.mrb[46].mxu1  ;;  %v3058_v53 = vmax.f32 %v3053_v3, 0.0 }
 0x451   :  { %v3033_v18 = vmax.f32 %v2972_v40, %v2976_v41  ;;  %v2978_v60 = vpop.f32.mrb[47].mxu1  ;;  %v5131_v40 = vld [vmem:[%s6433_s5 + $0xf8] sm:$0xff]   ;;  %v5132_v41 = vld [vmem:[%s6433_s5 + $0x100] sm:$0xff]  }
 0x452   :  { %v3034_v23 = vmax.f32 %v2974_v36, %v2978_v60  ;;  %v3069_v10 = vpack.c.bf16 %v3058_v53, %v3058_v53  ;;  %v5133_v60 = vld [vmem:[%s6433_s5 + $0x108] sm:$0xff]  }
 0x454   :  { %v3042_v19 = vmax.f32 %v3033_v18, %v3034_v23  ;;  %v5134_v23 = vld [vmem:[%s6433_s5 + $0x110] sm:$0xff]  }
 0x456   :  { %v3054_v20 = vadd.f32 %v4237_v31, %v3042_v19  ;;  %v2982_v1 = vpop.f32.mrb[48].mxu1  ;;  %v5135_v19 = vld [vmem:[%s6433_s5 + $0x118] sm:$0xff]  }
 0x457   :  { %v2984_v27 = vpop.f32.mrb[49].mxu1 }
 0x458   :  { %v3059_v56 = vmax.f32 %v3054_v20, 0.0  ;;  %v2986_v42 = vpop.f32.mrb[50].mxu1  ;;  %v5137_v20 = vld [vmem:[%s6433_s5 + $0x128] sm:$0xff]  }
 0x459   :  { %v3035_v28 = vmax.f32 %v2982_v1, %v2986_v42  ;;  %v2988_v6 = vpop.f32.mrb[51].mxu1  ;;  %v5138_v1 = vld [vmem:[%s6433_s5 + $0x130] sm:$0xff]  }
 0x45a   :  { %v3088_v29 = vpack.c.bf16 %v3059_v56, %v3059_v56  ;;  %v3036_v4 = vmax.f32 %v2984_v27, %v2988_v6  ;;  %v5139_v27 = vld [vmem:[%s6433_s5 + $0x138] sm:$0xff]   ;;  %v5141_v6 = vld [vmem:[#allocation6 + $0x8] sm:$0xff]  }
 0x45c   :  { %v3043_v44 = vmax.f32 %v3035_v28, %v3036_v4  ;;  %4441 = vmatmul.mubr.bf16.vlgmr.msra.gmra.mrb[60].mxu1 %v3088_v29  ;;  %v5140_v28 = vld [vmem:[#allocation6] sm:$0xff]   ;;  %v5143_v29 = vld [vmem:[#allocation6 + $0x18] sm:$0xff]  }
 0x45d   :  { %4445 = vmatpush3.bf16.msra.mxu1 %v5108_v43  ;;  %4460 = vmatprep.mubr.msk.bf16.mxu1 %vm5235_vm1, %v5234_v26  ;;  %v5142_v43 = vld [vmem:[#allocation6 + $0x10] sm:$0xff]   ;;  %v5144_v4 = vld [vmem:[#allocation6 + $0x20] sm:$0xff]  }
 0x45e   :  { %v6260_v45 = vadd.f32 %v4237_v31, %v3043_v44  ;;  %v2992_v61 = vpop.f32.mrb[52].mxu1  ;;  %4446 = vmatprep.subr.bf16.mxu1 %v5234_v26  ;;  %v5145_v44 = vld [vmem:[#allocation6 + $0x28] sm:$0xff]  }
 0x45f   :  { %v2994_v54 = vpop.f32.mrb[53].mxu1 }
 0x460   :  { %v2996_v14 = vpop.f32.mrb[54].mxu1  ;;  %v3060_v0 = vmax.f32 %v6260_v45, 0.0  ;;  %v5146_v45 = vld [vmem:[#allocation6 + $0x30] sm:$0xff]  }
 0x461   :  { %v3037_v59 = vmax.f32 %v2992_v61, %v2996_v14  ;;  %4447 = vmatpush3.bf16.msra.mxu1 %v5109_v30  ;;  %v2998_v16 = vpop.f32.mrb[55].mxu1 }
 0x462   :  { %v3038_v46 = vmax.f32 %v2994_v54, %v2998_v16  ;;  %4448 = vmatprep.subr.bf16.mxu1 %v5234_v26  ;;  %v3284_v52 = vpack.c.bf16 %v3060_v0, %v3060_v0  ;;  %v5153_v0 = vld [vmem:[#allocation8 + $0x28] sm:$0xff]  }
 0x464   :  { %v3044_v47 = vmax.f32 %v3037_v59, %v3038_v46  ;;  %v5147_v59 = vld [vmem:[#allocation6 + $0x38] sm:$0xff]  }
 0x465   :  { %4449 = vmatpush3.bf16.msra.mxu1 %v5110_v62 }
 0x466   :  { %v6270_v48 = vadd.f32 %v4237_v31, %v3044_v47  ;;  %v3002_v32 = vpop.f32.mrb[56].mxu1  ;;  %4450 = vmatprep.subr.bf16.mxu1 %v5234_v26 }
 0x467   :  { %v3004_v49 = vpop.f32.mrb[57].mxu1 }
 0x468   :  { %v3006_v22 = vpop.f32.mrb[58].mxu1  ;;  %v3061_v36 = vmax.f32 %v6270_v48, 0.0 }
 0x469   :  { %v3039_v24 = vmax.f32 %v3002_v32, %v3006_v22  ;;  %4451 = vmatpush3.bf16.msra.mxu1 %v5111_v17  ;;  %v3008_v33 = vpop.f32.mrb[59].mxu1 }
 0x46a   :  { %v3040_v25 = vmax.f32 %v3004_v49, %v3008_v33  ;;  %4452 = vmatprep.subr.bf16.mxu1 %v5234_v26  ;;  %v3393_v18 = vpack.c.bf16 %v3061_v36, %v3061_v36 }
 0x46c   :  { %v3045_v37 = vmax.f32 %v3039_v24, %v3040_v25 }
 0x46d   :  { %4453 = vmatpush3.bf16.msra.mxu1 %v5112_v5 }
 0x46e   :  { %v6280_v34 = vadd.f32 %v4237_v31, %v3045_v37  ;;  %4454 = vmatprep.subr.bf16.mxu1 %v5234_v26  ;;  %v5136_v31 = vld [vmem:[%s6433_s5 + $0x120] sm:$0xff]  }
 0x470   :  { %v3062_v56 = vmax.f32 %v6280_v34, 0.0 }
 0x471   :  { %4455 = vmatpush3.bf16.msra.mxu1 %v5113_v51 }
 0x472   :  { %4456 = vmatprep.subr.bf16.mxu1 %v5234_v26  ;;  %v3502_v42 = vpack.c.bf16 %v3062_v56, %v3062_v56 }
 0x475   :  { %4457 = vmatpush3.bf16.msra.mxu1 %v5114_v50  ;;  %v4342_v50 = vld [vmem:[%s6434_s6] ss:$0 sm:$0xff] }
 0x476   :  { %4458 = vmatprep.subr.bf16.mxu1 %v5234_v26 }
 0x479   :  { %4459 = vmatpush3.bf16.msra.mxu1 %v5115_v35 }
 0x47a   :  { %4464 = vmatprep.subr.bf16.mxu1 %v5234_v26 }
 0x47c   :  { %4461 = vmatmul.mubr.bf16.vlgmr.msra.gmra.mrb[64].mxu1 %v3069_v10 }
 0x47d   :  { %4465 = vmatpush3.bf16.msra.mxu1 %v5116_v55  ;;  %4480 = vmatprep.mubr.msk.bf16.mxu1 %vm5235_vm1, %v5234_v26 }
 0x47e   :  { %4466 = vmatprep.subr.bf16.mxu1 %v5234_v26 }
 0x481   :  { %4467 = vmatpush3.bf16.msra.mxu1 %v5117_v8 }
 0x482   :  { %4468 = vmatprep.subr.bf16.mxu1 %v5234_v26 }
 0x485   :  { %4469 = vmatpush3.bf16.msra.mxu1 %v5118_v15  ;;  %v5148_v15 = vld [vmem:[#allocation8] sm:$0xff]  }
 0x486   :  { %4470 = vmatprep.subr.bf16.mxu1 %v5234_v26 }
 0x489   :  { %4471 = vmatpush3.bf16.msra.mxu1 %v5119_v9 }
 0x48a   :  { %4472 = vmatprep.subr.bf16.mxu1 %v5234_v26 }
 0x48d   :  { %4473 = vmatpush3.bf16.msra.mxu1 %v5120_v11  ;;  %v5149_v11 = vld [vmem:[#allocation8 + $0x8] sm:$0xff]  }
 0x48e   :  { %4474 = vmatprep.subr.bf16.mxu1 %v5234_v26 }
 0x491   :  { %4475 = vmatpush3.bf16.msra.mxu1 %v5121_v7  ;;  %v5150_v7 = vld [vmem:[#allocation8 + $0x10] sm:$0xff]  }
 0x492   :  { %4476 = vmatprep.subr.bf16.mxu1 %v5234_v26 }
 0x495   :  { %4477 = vmatpush3.bf16.msra.mxu1 %v5122_v2  ;;  %v5151_v2 = vld [vmem:[#allocation8 + $0x18] sm:$0xff]  }
 0x496   :  { %4478 = vmatprep.subr.bf16.mxu1 %v5234_v26 }
 0x499   :  { %4479 = vmatpush3.bf16.msra.mxu1 %v5123_v63  ;;  %v5152_v63 = vld [vmem:[#allocation8 + $0x20] sm:$0xff]  }
 0x49a   :  { %4484 = vmatprep.subr.bf16.mxu1 %v5234_v26 }
 0x49c   :  { %4481 = vmatmul.mubr.bf16.vlgmr.msra.gmra.mrb[68].mxu1 %v3284_v52  ;;  %v5155_v52 = vld [vmem:[#allocation8 + $0x38] sm:$0xff]  }
 0x49d   :  { %4485 = vmatpush3.bf16.msra.mxu1 %v5124_v21  ;;  %4500 = vmatprep.mubr.msk.bf16.mxu1 %vm5235_vm1, %v5234_v26  ;;  %v5154_v21 = vld [vmem:[#allocation8 + $0x30] sm:$0xff]  }
 0x49e   :  { %4486 = vmatprep.subr.bf16.mxu1 %v5234_v26 }
 0x4a1   :  { %4487 = vmatpush3.bf16.msra.mxu1 %v5125_v57  ;;  %v4343_v57 = vld [vmem:[%s6436_s8] ss:$0 sm:$0xff] }
 0x4a2   :  { %4488 = vmatprep.subr.bf16.mxu1 %v5234_v26 }
 0x4a5   :  { %4489 = vmatpush3.bf16.msra.mxu1 %v5126_v12 }
 0x4a6   :  { %4490 = vmatprep.subr.bf16.mxu1 %v5234_v26 }
 0x4a9   :  { %4491 = vmatpush3.bf16.msra.mxu1 %v5127_v38 }
 0x4aa   :  { %4492 = vmatprep.subr.bf16.mxu1 %v5234_v26 }
 0x4ad   :  { %4493 = vmatpush3.bf16.msra.mxu1 %v5128_v39 }
 0x4ae   :  { %4494 = vmatprep.subr.bf16.mxu1 %v5234_v26 }
 0x4b1   :  { %4495 = vmatpush3.bf16.msra.mxu1 %v5129_v13 }
 0x4b2   :  { %4496 = vmatprep.subr.bf16.mxu1 %v5234_v26 }
 0x4b5   :  { %4497 = vmatpush3.bf16.msra.mxu1 %v5130_v58 }
 0x4b6   :  { %4498 = vmatprep.subr.bf16.mxu1 %v5234_v26 }
 0x4b9   :  { %4499 = vmatpush3.bf16.msra.mxu1 %v5131_v40 }
 0x4ba   :  { %4504 = vmatprep.subr.bf16.mxu1 %v5234_v26 }
 0x4bc   :  { %4501 = vmatmul.mubr.bf16.vlgmr.msra.gmra.mrb[72].mxu1 %v3393_v18 }
 0x4bd   :  { %4505 = vmatpush3.bf16.msra.mxu1 %v5132_v41  ;;  %4520 = vmatprep.mubr.msk.bf16.mxu1 %vm5235_vm1, %v5234_v26  ;;  %v4352_v41 = vld [vmem:[%s6438_s10] ss:$0 sm:$0xff] }
 0x4be   :  { %4506 = vmatprep.subr.bf16.mxu1 %v5234_v26 }
 0x4c1   :  { %4507 = vmatpush3.bf16.msra.mxu1 %v5133_v60 }
 0x4c2   :  { %4508 = vmatprep.subr.bf16.mxu1 %v5234_v26 }
 0x4c5   :  { %4509 = vmatpush3.bf16.msra.mxu1 %v5134_v23 }
 0x4c6   :  { %4510 = vmatprep.subr.bf16.mxu1 %v5234_v26 }
 0x4c9   :  { %4511 = vmatpush3.bf16.msra.mxu1 %v5135_v19 }
 0x4ca   :  { %4512 = vmatprep.subr.bf16.mxu1 %v5234_v26 }
 0x4cd   :  { %4513 = vmatpush3.bf16.msra.mxu1 %v5136_v31 }
 0x4ce   :  { %4514 = vmatprep.subr.bf16.mxu1 %v5234_v26 }
 0x4d1   :  { %4515 = vmatpush3.bf16.msra.mxu1 %v5137_v20 }
 0x4d2   :  { %4516 = vmatprep.subr.bf16.mxu1 %v5234_v26 }
 0x4d5   :  { %4517 = vmatpush3.bf16.msra.mxu1 %v5138_v1 }
 0x4d6   :  { %4518 = vmatprep.subr.bf16.mxu1 %v5234_v26 }
 0x4d9   :  { %4519 = vmatpush3.bf16.msra.mxu1 %v5139_v27 }
 0x4da   :  { %4524 = vmatprep.subr.bf16.mxu1 %v5234_v26 }
 0x4dc   :  { %4521 = vmatmul.mubr.bf16.vlgmr.msra.gmra.mrb[76].mxu1 %v3502_v42 }
 0x4dd   :  { %4540 = vmatprep.mubr.msk.bf16.mxu1 %vm5235_vm1, %v5234_v26  ;;  %4525 = vmatpush3.bf16.msra.mxu1 %v5140_v28 }
 0x4de   :  { %4526 = vmatprep.subr.bf16.mxu1 %v5234_v26 }
 0x4e1   :  { %4527 = vmatpush3.bf16.msra.mxu1 %v5141_v6 }
 0x4e2   :  { %4528 = vmatprep.subr.bf16.mxu1 %v5234_v26 }
 0x4e5   :  { %4529 = vmatpush3.bf16.msra.mxu1 %v5142_v43 }
 0x4e6   :  { %4530 = vmatprep.subr.bf16.mxu1 %v5234_v26 }
 0x4e9   :  { %4531 = vmatpush3.bf16.msra.mxu1 %v5143_v29 }
 0x4ea   :  { %4532 = vmatprep.subr.bf16.mxu1 %v5234_v26 }
 0x4ed   :  { %4533 = vmatpush3.bf16.msra.mxu1 %v5144_v4 }
 0x4ee   :  { %4534 = vmatprep.subr.bf16.mxu1 %v5234_v26 }
 0x4f1   :  { %4535 = vmatpush3.bf16.msra.mxu1 %v5145_v44 }
 0x4f2   :  { %4536 = vmatprep.subr.bf16.mxu1 %v5234_v26 }
 0x4f5   :  { %4537 = vmatpush3.bf16.msra.mxu1 %v5146_v45 }
 0x4f6   :  { %4538 = vmatprep.subr.bf16.mxu1 %v5234_v26 }
 0x4f9   :  { %4539 = vmatpush3.bf16.msra.mxu1 %v5147_v59 }
 0x4fa   :  { %4544 = vmatprep.subr.bf16.mxu1 %v5234_v26 }
 0x52f   :  { %v3188_v30 = vpop.f32.mrb[60].mxu1 }
 0x530   :  { %v4442_v61 = vpop.f32.mrb[61].mxu1 }
 0x531   :  { %v3191_v54 = vpop.f32.mrb[62].mxu1 }
 0x532   :  { %v4443_v14 = vpop.f32.mrb[63].mxu1 }
 0x54f   :  { %v3276_v16 = vpop.f32.mrb[64].mxu1 }
 0x550   :  { %v3277_v62 = vadd.f32 %v3276_v16, %v3188_v30  ;;  %v4462_v46 = vpop.f32.mrb[65].mxu1 }
 0x551   :  { %v3279_v47 = vpop.f32.mrb[66].mxu1 }
 0x552   :  { %v4463_v17 = vpop.f32.mrb[67].mxu1 }
 0x56f   :  { %v3384_v48 = vpop.f32.mrb[68].mxu1 }
 0x570   :  { %v3390_v32 = vadd.f32 %v3384_v48, %v3277_v62  ;;  %v4482_v49 = vpop.f32.mrb[69].mxu1 }
 0x571   :  { %v3387_v22 = vpop.f32.mrb[70].mxu1 }
 0x572   :  { %v4483_v24 = vpop.f32.mrb[71].mxu1 }
 0x58f   :  { %v3493_v33 = vpop.f32.mrb[72].mxu1 }
 0x590   :  { %v3499_v5 = vadd.f32 %v3493_v33, %v3390_v32  ;;  %v4502_v25 = vpop.f32.mrb[73].mxu1 }
 0x591   :  { %v3496_v37 = vpop.f32.mrb[74].mxu1 }
 0x592   :  { %v4503_v51 = vpop.f32.mrb[75].mxu1 }
 0x5af   :  { %v3602_v34 = vpop.f32.mrb[76].mxu1 }
 0x5b0   :  { %v3608_v3 = vadd.f32 %v3602_v34, %v3499_v5  ;;  %v4522_v35 = vpop.f32.mrb[77].mxu1 }
 0x5b1   :  { %v3605_v53 = vpop.f32.mrb[78].mxu1 }
 0x5b2   :  { %v3616_v55 = vadd.f32 %v4342_v50, %v3608_v3  ;;  %v4523_v10 = vpop.f32.mrb[79].mxu1 }
 0x5b4   :  { %v3617_v8 = vmax.f32 %v3616_v55, 0.0 }
 0x5b6   :  { %v3618_v9 = vpack.c.bf16 %v3617_v8, %v3617_v8 }
 0x5b8   :  { %4541 = vmatmul.mubr.bf16.vlgmr.msra.gmra.mrb[80].mxu1 %v3618_v9 }
 0x5b9   :  { %4545 = vmatpush3.bf16.msra.mxu1 %v5148_v15  ;;  %4560 = vmatprep.mubr.msk.bf16.mxu1 %vm5235_vm1, %v5234_v26 }
 0x5ba   :  { %4546 = vmatprep.subr.bf16.mxu1 %v5234_v26 }
 0x5bd   :  { %4547 = vmatpush3.bf16.msra.mxu1 %v5149_v11 }
 0x5be   :  { %4548 = vmatprep.subr.bf16.mxu1 %v5234_v26 }
 0x5c1   :  { %4549 = vmatpush3.bf16.msra.mxu1 %v5150_v7 }
 0x5c2   :  { %4550 = vmatprep.subr.bf16.mxu1 %v5234_v26 }
 0x5c5   :  { %4551 = vmatpush3.bf16.msra.mxu1 %v5151_v2 }
 0x5c6   :  { %4552 = vmatprep.subr.bf16.mxu1 %v5234_v26 }
 0x5c9   :  { %4553 = vmatpush3.bf16.msra.mxu1 %v5152_v63 }
 0x5ca   :  { %4554 = vmatprep.subr.bf16.mxu1 %v5234_v26 }
 0x5cd   :  { %4555 = vmatpush3.bf16.msra.mxu1 %v5153_v0 }
 0x5ce   :  { %4556 = vmatprep.subr.bf16.mxu1 %v5234_v26 }
 0x5d1   :  { %4557 = vmatpush3.bf16.msra.mxu1 %v5154_v21 }
 0x5d2   :  { %4558 = vmatprep.subr.bf16.mxu1 %v5234_v26 }
 0x5d5   :  { %4559 = vmatpush3.bf16.msra.mxu1 %v5155_v52 }
 0x68b   :  { %v3724_v12 = vpop.f32.mrb[80].mxu1 }
 0x68c   :  { %v3725_v38 = vadd.f32 %v4343_v57, %v3724_v12  ;;  %v4542_v39 = vpop.f32.mrb[81].mxu1 }
 0x68d   :  { %v3727_v13 = vpop.f32.mrb[82].mxu1 }
 0x68e   :  { %v3730_v58 = vmax.f32 %v3725_v38, 0.0  ;;  %v4543_v40 = vpop.f32.mrb[83].mxu1 }
 0x690   :  { %v3731_v36 = vpack.c.bf16 %v3730_v58, %v3730_v58 }
 0x692   :  { %4561 = vmatmul.mubr.bf16.vlgmr.msra.gmra.mrb[84].mxu1 %v3731_v36 }
 0x765   :  { %v3837_v18 = vpop.f32.mrb[84].mxu1 }
 0x766   :  { %v3838_v26 = vadd.f32 %v4352_v41, %v3837_v18  ;;  %v4562_v60 = vpop.f32.mrb[85].mxu1 }
 0x767   :  { %v3840_v23 = vpop.f32.mrb[86].mxu1 }
 0x768   :  { %3843 = vst [vmem:[%s6439_s11] sm:$0xff] %v3838_v26  ;;  %v4563_v19 = vpop.f32.mrb[87].mxu1 }
 0x769   :  { %3848 = vsyncpa [#allocation5], 1 }
 0x76a   :  { %3849 = vsyncpa [#allocation7], 1 }

</bundles_post_ra>
